<compile_context>
chip_gen: v7x
topology: tpu7x:2x2x1
jax: 0.10.0
libtpu: 0.0.40
codegen_flags: <defaults>
</compile_context>

<pallas_src>
import functools
import math

import jax
import jax.numpy as jnp
from jax import lax
from jax.experimental import pallas as pl
from jax.experimental.pallas import tpu as pltpu

LN_EPS = 1e-5                  # torch.nn.LayerNorm default
_INV_SQRT2 = 0.7071067811865476


def _layernorm(z, gamma, beta):
    mu = jnp.mean(z, axis=-1, keepdims=True)
    var = jnp.mean((z - mu) ** 2, axis=-1, keepdims=True)
    return (z - mu) * lax.rsqrt(var + LN_EPS) * gamma + beta


# ---------------------------------------------------------------------------
# Kernel 1: LayerNorm1 + fused QKV projection (once per token).
# ---------------------------------------------------------------------------
def qkv_projection_kernel(
    x_ref,                     # (1, TS, D)  f32
    ln1_g_ref, ln1_b_ref,      # (1, D)      f32
    wqkv_ref, bqkv_ref,        # (D, 3D) bf16 (q columns pre-scaled), (1, 3D) f32
    q_ref, k_ref, v_ref,       # (1, H, TS, dh) bf16, head-major outputs
    *,
    num_heads: int,
    dim_head: int,
):
    f32 = jnp.float32
    H, dh = num_heads, dim_head
    D = x_ref.shape[2]

    x = x_ref[0].astype(f32)                                     # (TS, D)
    ln = _layernorm(x, ln1_g_ref[...], ln1_b_ref[...])
    qkv = jnp.dot(ln.astype(wqkv_ref.dtype), wqkv_ref[...],
                  preferred_element_type=f32) + bqkv_ref[...]    # (TS, 3D) f32
    qkv = qkv.astype(q_ref.dtype)

    # Head split happens here, once per token, so the attention kernel gets
    # head-major blocks straight from its BlockSpecs (no per-step relayout).
    def head_stack(z):                                           # (TS, H*dh) -> (H, TS, dh)
        return jnp.stack([z[:, h * dh:(h + 1) * dh] for h in range(H)], axis=0)

    q_ref[0] = head_stack(qkv[:, :D])          # already scaled by 1/sqrt(dh)
    k_ref[0] = head_stack(qkv[:, D:2 * D])
    v_ref[0] = head_stack(qkv[:, 2 * D:])


# ---------------------------------------------------------------------------
# Kernel 2: attention + output projection + residual + LayerNorm2 + MLP.
# ---------------------------------------------------------------------------
def attention_mlp_kernel(
    x_ref,                     # (1, TS, D)      f32  residual stream
    q_ref,                     # (1, H, TS, dh)  bf16 (pre-scaled)
    k_ref, v_ref,              # (1, H, S, dh)   bf16
    wo_ref, bo_ref,            # (D, D) bf16, (1, D) f32
    ln2_g_ref, ln2_b_ref,      # (1, D) f32
    w1_ref, b1_ref,            # (D, Dm) bf16, (1, Dm) f32
    w2_ref, b2_ref,            # (Dm, D) bf16, (1, D) f32
    o_ref,                     # (1, TS, D)
    *,
    num_heads: int,
):
    f32 = jnp.float32
    cdt = wo_ref.dtype
    H = num_heads

    x_tile = x_ref[0].astype(f32)                                # (TS, D)
    q_h = q_ref[0]                                               # (H, TS, dh)
    k_h = k_ref[0]                                               # (H, S, dh)
    v_h = v_ref[0]                                               # (H, S, dh)

    # scores (scale already folded into q); numerically stable softmax in f32
    s = jnp.einsum("hqd,hkd->hqk", q_h, k_h,
                   preferred_element_type=f32)                   # (H, TS, S)
    s = s - jnp.max(s, axis=-1, keepdims=True)
    e = jnp.exp(s)                                               # f32 (v5e-safe)
    denom = jnp.sum(e, axis=-1, keepdims=True)                   # (H, TS, 1)

    # PV with unnormalized probabilities; normalization deferred to o_h
    o_h = jnp.einsum("hqk,hkd->hqd", e.astype(cdt), v_h,
                     preferred_element_type=f32)                 # (H, TS, dh)
    o_h = o_h * pl.reciprocal(denom, approx=True)

    # one lane relayout of the head outputs, then a single full-depth matmul
    ctx = jnp.concatenate([o_h[h] for h in range(H)], axis=-1)   # (TS, D)
    attn = jnp.dot(ctx.astype(cdt), wo_ref[...],
                   preferred_element_type=f32) + bo_ref[...]     # (TS, D)

    resid = attn + x_tile          # dropout == identity at inference

    ln2 = _layernorm(resid, ln2_g_ref[...], ln2_b_ref[...])
    h1 = jnp.dot(ln2.astype(cdt), w1_ref[...],
                 preferred_element_type=f32) + b1_ref[...]       # (TS, Dm)
    g = 0.5 * h1 * (1.0 + lax.erf(h1 * _INV_SQRT2))              # exact GELU
    h2 = jnp.dot(g.astype(cdt), w2_ref[...],
                 preferred_element_type=f32) + b2_ref[...]       # (TS, D)

    o_ref[0] = (h2 + resid).astype(o_ref.dtype)


# ---------------------------------------------------------------------------
# Parameter fusion (torch-style per-head params -> MXU-friendly fused weights)
# ---------------------------------------------------------------------------
def _fuse_params(params, num_heads, dim_head, compute_dtype):
    H, dh = num_heads, dim_head
    D = params["wq"].shape[1]
    f32 = jnp.float32
    c = lambda a: a.astype(compute_dtype)     # matmul weights -> bf16
    f = lambda a: a.astype(f32)               # biases / LN params stay f32
    inv_scale = 1.0 / math.sqrt(dh)           # fold 1/sqrt(dh) into wq/bq

    # (H, D, dh) -> (D, H*dh): head h occupies lane columns [h*dh, (h+1)*dh)
    flat_w = lambda w: jnp.transpose(w, (1, 0, 2)).reshape(D, H * dh)
    flat_b = lambda b: b.reshape(1, H * dh)

    wqkv = jnp.concatenate([flat_w(params["wq"]) * inv_scale,
                            flat_w(params["wk"]),
                            flat_w(params["wv"])], axis=1)       # (D, 3D)
    bqkv = jnp.concatenate([flat_b(params["bq"]) * inv_scale,
                            flat_b(params["bk"]),
                            flat_b(params["bv"])], axis=1)       # (1, 3D)

    proj_weights = [f(params["ln1_g"]), f(params["ln1_b"]), c(wqkv), f(bqkv)]
    attn_weights = [c(params["wo"]), f(params["bo"]),
                    f(params["ln2_g"]), f(params["ln2_b"]),
                    c(params["w1"]), f(params["b1"]),
                    c(params["w2"]), f(params["b2"])]
    return proj_weights, attn_weights


# ---------------------------------------------------------------------------
# Wrapper
# ---------------------------------------------------------------------------
def vision_encoder_layer(x, params, *, num_heads, dim_head, seq_tile=None,
                         compute_dtype=jnp.bfloat16, single_buffer_weights=True):
    B, S, D = x.shape
    assert num_heads * dim_head == D
    Dm = params["w1"].shape[1]
    H, dh = num_heads, dim_head

    proj_w, attn_w = _fuse_params(params, num_heads, dim_head, compute_dtype)
    nbytes = lambda a: int(a.size) * a.dtype.itemsize
    proj_w_bytes = sum(nbytes(a) for a in proj_w)
    attn_w_bytes = sum(nbytes(a) for a in attn_w)
    cd_bytes = jnp.dtype(compute_dtype).itemsize

    # --- VMEM budget derived from the hardware, ~15% headroom ---------------
    try:
        vmem_cap = int(pltpu.get_tpu_info().vmem_capacity_bytes)
    except Exception:
        vmem_cap = 64 << 20                  # conservative (v7x-sized) fallback
    vmem_budget = int(vmem_cap * 0.85)

    lane_dh = max(dh, 128)                   # dh-minor blocks are lane-padded

    def attn_vmem_estimate(ts, single_buffer):
        wb = attn_w_bytes * (1 if single_buffer else 2)
        io = 2 * (4 * ts * D                        # x tile (f32), dbl-buffered
                  + cd_bytes * H * ts * lane_dh     # q tile
                  + 2 * cd_bytes * H * S * lane_dh  # k, v (DMA'd once per batch)
                  + 4 * ts * D)                     # out tile
        inter = 4 * (2 * H * ts * S                 # scores + exp (f32)
                     + 2 * ts * Dm                  # MLP hidden + GELU
                     + 8 * ts * D)                  # ctx/attn/resid/ln2/... slack
        return wb + io + inter

    # --- sequence tile: largest candidate whose VMEM estimate fits ----------
    if seq_tile is None:
        cands = [t for t in (256, 128, 64, 32, 16, 8) if t <= S and S % t == 0]
        if S <= 256:
            cands = [S] + cands              # small/odd S: a single full tile
        seq_tile = next(
            (t for t in cands
             if attn_vmem_estimate(t, single_buffer_weights) <= vmem_budget),
            cands[-1] if cands else S)
    TS = seq_tile
    assert S % TS == 0 and (TS % 8 == 0 or TS == S)
    n_seq_tiles = S // TS

    # --- advisory cost estimates for the XLA scheduler ----------------------
    proj_cost = pl.CostEstimate(
        flops=int(2 * B * S * D * 3 * D),
        transcendentals=0,
        bytes_accessed=int(4 * B * S * D + 3 * cd_bytes * B * S * D + proj_w_bytes))
    attn_cost = pl.CostEstimate(
        flops=int(2 * B * (2 * H * S * S * dh + S * D * D + 2 * S * D * Dm)),
        transcendentals=int(B * H * S * S),
        bytes_accessed=int(8 * B * S * D + 3 * cd_bytes * B * S * D + attn_w_bytes))

    compiler_params = pltpu.CompilerParams(
        dimension_semantics=("parallel", "parallel"),
        vmem_limit_bytes=vmem_budget)

    def run(single_buffer):
        def const_spec(a):
            n = a.ndim
            kwargs = {"pipeline_mode": pl.Buffered(1)} if single_buffer else {}
            return pl.BlockSpec(a.shape, lambda b, s, _n=n: (0,) * _n, **kwargs)

        qkv_struct = jax.ShapeDtypeStruct((B, H, S, dh), compute_dtype)
        head_tile_spec = pl.BlockSpec((1, H, TS, dh), lambda b, s: (b, 0, s, 0))
        head_full_spec = pl.BlockSpec((1, H, S, dh), lambda b, s: (b, 0, 0, 0))
        row_tile_spec = pl.BlockSpec((1, TS, D), lambda b, s: (b, s, 0))

        projection = pl.pallas_call(
            functools.partial(qkv_projection_kernel, num_heads=H, dim_head=dh),
            out_shape=(qkv_struct, qkv_struct, qkv_struct),
            grid_spec=pltpu.PrefetchScalarGridSpec(
                num_scalar_prefetch=0,
                grid=(B, n_seq_tiles),
                in_specs=[row_tile_spec] + [const_spec(w) for w in proj_w],
                out_specs=(head_tile_spec, head_tile_spec, head_tile_spec)),
            compiler_params=compiler_params,
            cost_estimate=proj_cost)

        attention_mlp = pl.pallas_call(
            functools.partial(attention_mlp_kernel, num_heads=H),
            out_shape=jax.ShapeDtypeStruct((B, S, D), x.dtype),
            grid_spec=pltpu.PrefetchScalarGridSpec(
                num_scalar_prefetch=0,
                grid=(B, n_seq_tiles),
                in_specs=[row_tile_spec, head_tile_spec,
                          head_full_spec, head_full_spec]
                         + [const_spec(w) for w in attn_w],
                out_specs=row_tile_spec),
            compiler_params=compiler_params,
            cost_estimate=attn_cost)

        q, k, v = projection(x, *proj_w)
        return attention_mlp(x, q, k, v, *attn_w)

    if single_buffer_weights:
        try:
            out = run(True)
            jax.block_until_ready(out)
            return out
        except Exception:
            # This JAX/Mosaic build does not honor pipeline_mode=pl.Buffered(1);
            # fall back to default double-buffered weights.
            pass
    return run(False)


# ---------------------------------------------------------------------------
# Reference / test harness
# ---------------------------------------------------------------------------
def init_params(key, dim_model, num_heads, dim_head, dim_mlp):
    ks = jax.random.split(key, 8)
    scale = 0.02
    return {
        "ln1_g": jnp.ones((1, dim_model), jnp.float32),
        "ln1_b": jnp.zeros((1, dim_model), jnp.float32),
        "wq": scale * jax.random.normal(ks[0], (num_heads, dim_model, dim_head), jnp.float32),
        "bq": scale * jax.random.normal(ks[1], (num_heads, 1, dim_head), jnp.float32),
        "wk": scale * jax.random.normal(ks[2], (num_heads, dim_model, dim_head), jnp.float32),
        "bk": scale * jax.random.normal(ks[3], (num_heads, 1, dim_head), jnp.float32),
        "wv": scale * jax.random.normal(ks[4], (num_heads, dim_model, dim_head), jnp.float32),
        "bv": scale * jax.random.normal(ks[5], (num_heads, 1, dim_head), jnp.float32),
        "wo": scale * jax.random.normal(ks[6], (dim_model, dim_model), jnp.float32),
        "bo": jnp.zeros((1, dim_model), jnp.float32),
        "ln2_g": jnp.ones((1, dim_model), jnp.float32),
        "ln2_b": jnp.zeros((1, dim_model), jnp.float32),
        "w1": scale * jax.random.normal(ks[7], (dim_model, dim_mlp), jnp.float32),
        "b1": jnp.zeros((1, dim_mlp), jnp.float32),
        "w2": scale * jax.random.normal(jax.random.fold_in(key, 99), (dim_mlp, dim_model), jnp.float32),
        "b2": jnp.zeros((1, dim_model), jnp.float32),
    }


def reference_forward(x, p, num_heads, dim_head):
    """Pure-JAX f32 reference mirroring the PyTorch module (eval mode)."""
    def ln(z, g, b):
        mu = jnp.mean(z, axis=-1, keepdims=True)
        var = jnp.mean((z - mu) ** 2, axis=-1, keepdims=True)
        return (z - mu) / jnp.sqrt(var + LN_EPS) * g + b

    ln_x = ln(x, p["ln1_g"], p["ln1_b"])
    heads = []
    for h in range(num_heads):
        q = ln_x @ p["wq"][h] + p["bq"][h]
        k = ln_x @ p["wk"][h] + p["bk"][h]
        v = ln_x @ p["wv"][h] + p["bv"][h]
        s = jnp.einsum("bqd,bkd->bqk", q, k) / jnp.sqrt(jnp.float32(dim_head))
        a = jax.nn.softmax(s, axis=-1)
        heads.append(jnp.einsum("bqk,bkd->bqd", a, v))
    attn = jnp.concatenate(heads, axis=-1) @ p["wo"] + p["bo"]
    residual = attn + x
    ln2 = ln(residual, p["ln2_g"], p["ln2_b"])
    h1 = ln2 @ p["w1"] + p["b1"]
    g = 0.5 * h1 * (1.0 + lax.erf(h1 / jnp.sqrt(jnp.float32(2.0))))
    return g @ p["w2"] + p["b2"] + residual


if __name__ == "__main__":
    # Small shapes consistent with the module's (batch, seq, hidden) forward.
    B, S = 2, 8
    dim_model, num_heads, dim_mlp = 32, 4, 64
    dim_head = dim_model // num_heads

    key = jax.random.PRNGKey(0)
    kx, kp = jax.random.split(key)
    x = jax.random.normal(kx, (B, S, dim_model), jnp.float32)
    params = init_params(kp, dim_model, num_heads, dim_head, dim_mlp)

    out = vision_encoder_layer(x, params, num_heads=num_heads, dim_head=dim_head)
    out = jax.block_until_ready(out)

    ref = reference_forward(x, params, num_heads, dim_head)
    assert out.shape == (B, S, dim_model)
    # bf16 matmul inputs (f32 accumulation) + approx softmax reciprocal
    # -> looser tolerance vs. the f32 reference.
    max_err = float(jnp.max(jnp.abs(out - ref)))
    assert jnp.allclose(out, ref, atol=2e-2, rtol=2e-2), (
        f"mismatch vs reference, max abs err = {max_err}")

    print("KERNEL_OK")
</pallas_src>

<mosaic_0001>
module attributes {stable_mosaic.version = 11 : i64} {
  func.func @qkv_projection_kernel(%arg0: i32, %arg1: i32, %arg2: memref<1x8x32xf32, #tpu.memory_space<vmem>>, %arg3: memref<1x32xf32, #tpu.memory_space<vmem>>, %arg4: memref<1x32xf32, #tpu.memory_space<vmem>>, %arg5: memref<32x96xbf16, #tpu.memory_space<vmem>>, %arg6: memref<1x96xf32, #tpu.memory_space<vmem>>, %arg7: memref<1x4x8x8xbf16, #tpu.memory_space<vmem>>, %arg8: memref<1x4x8x8xbf16, #tpu.memory_space<vmem>>, %arg9: memref<1x4x8x8xbf16, #tpu.memory_space<vmem>>) attributes {dimension_semantics = [#tpu.dimension_semantics<parallel>, #tpu.dimension_semantics<parallel>], iteration_bounds = array<i64: 2, 1>, scalar_prefetch = 0 : i64, scratch_operands = 0 : i64, tpu.core_type = #tpu.core_type<tc>, window_params = [{transform_indices = @transform_0, window_bounds = array<i64: 1, 8, 32>}, {pipeline_mode = #tpu.pipeline_mode<synchronous>, transform_indices = @transform_1, window_bounds = array<i64: 1, 32>}, {pipeline_mode = #tpu.pipeline_mode<synchronous>, transform_indices = @transform_2, window_bounds = array<i64: 1, 32>}, {pipeline_mode = #tpu.pipeline_mode<synchronous>, transform_indices = @transform_3, window_bounds = array<i64: 32, 96>}, {pipeline_mode = #tpu.pipeline_mode<synchronous>, transform_indices = @transform_4, window_bounds = array<i64: 1, 96>}, {transform_indices = @transform_5, window_bounds = array<i64: 1, 4, 8, 8>}, {transform_indices = @transform_6, window_bounds = array<i64: 1, 4, 8, 8>}, {transform_indices = @transform_7, window_bounds = array<i64: 1, 4, 8, 8>}]} {
    %c0 = arith.constant 0 : index
    %c0_0 = arith.constant 0 : index
    %c0_1 = arith.constant 0 : index
    %0 = vector.load %arg2[%c0, %c0_0, %c0_1] : memref<1x8x32xf32, #tpu.memory_space<vmem>>, vector<1x8x32xf32>
    %1 = vector.shape_cast %0 : vector<1x8x32xf32> to vector<8x32xf32>
    %c0_2 = arith.constant 0 : index
    %c0_3 = arith.constant 0 : index
    %2 = vector.load %arg3[%c0_2, %c0_3] : memref<1x32xf32, #tpu.memory_space<vmem>>, vector<1x32xf32>
    %c0_4 = arith.constant 0 : index
    %c0_5 = arith.constant 0 : index
    %3 = vector.load %arg4[%c0_4, %c0_5] : memref<1x32xf32, #tpu.memory_space<vmem>>, vector<1x32xf32>
    %cst = arith.constant dense<0.000000e+00> : vector<8xf32>
    %4 = vector.multi_reduction <add>, %1, %cst [1] : vector<8x32xf32> to vector<8xf32>
    %5 = vector.shape_cast %4 : vector<8xf32> to vector<8x1xf32>
    %cst_6 = arith.constant 3.200000e+01 : f32
    %6 = vector.broadcast %cst_6 : f32 to vector<8x1xf32>
    %7 = arith.divf %5, %6 : vector<8x1xf32>
    %8 = vector.broadcast %7 : vector<8x1xf32> to vector<8x32xf32>
    %9 = arith.subf %1, %8 : vector<8x32xf32>
    %10 = arith.mulf %9, %9 : vector<8x32xf32>
    %cst_7 = arith.constant dense<0.000000e+00> : vector<8xf32>
    %11 = vector.multi_reduction <add>, %10, %cst_7 [1] : vector<8x32xf32> to vector<8xf32>
    %12 = vector.shape_cast %11 : vector<8xf32> to vector<8x1xf32>
    %cst_8 = arith.constant 3.200000e+01 : f32
    %13 = vector.broadcast %cst_8 : f32 to vector<8x1xf32>
    %14 = arith.divf %12, %13 : vector<8x1xf32>
    %15 = vector.broadcast %7 : vector<8x1xf32> to vector<8x32xf32>
    %16 = arith.subf %1, %15 : vector<8x32xf32>
    %cst_9 = arith.constant 9.99999974E-6 : f32
    %17 = vector.broadcast %cst_9 : f32 to vector<8x1xf32>
    %18 = arith.addf %14, %17 : vector<8x1xf32>
    %19 = math.rsqrt %18 : vector<8x1xf32>
    %20 = vector.broadcast %19 : vector<8x1xf32> to vector<8x32xf32>
    %21 = arith.mulf %16, %20 : vector<8x32xf32>
    %22 = vector.broadcast %2 : vector<1x32xf32> to vector<8x32xf32>
    %23 = arith.mulf %21, %22 : vector<8x32xf32>
    %24 = vector.broadcast %3 : vector<1x32xf32> to vector<8x32xf32>
    %25 = arith.addf %23, %24 : vector<8x32xf32>
    %26 = arith.truncf %25 : vector<8x32xf32> to vector<8x32xbf16>
    %c0_10 = arith.constant 0 : index
    %c0_11 = arith.constant 0 : index
    %27 = vector.load %arg5[%c0_10, %c0_11] : memref<32x96xbf16, #tpu.memory_space<vmem>>, vector<32x96xbf16>
    %cst_12 = arith.constant dense<0.000000e+00> : vector<8x96xf32>
    %28 = tpu.matmul %26, %27, %cst_12 {dimension_numbers = #tpu.dot_dimension_numbers<[1], [0], [0], [1], [0, 0, 1, 1], [], []>} : vector<8x32xbf16>, vector<32x96xbf16>, vector<8x96xf32> -> vector<8x96xf32>
    %c0_13 = arith.constant 0 : index
    %c0_14 = arith.constant 0 : index
    %29 = vector.load %arg6[%c0_13, %c0_14] : memref<1x96xf32, #tpu.memory_space<vmem>>, vector<1x96xf32>
    %30 = vector.broadcast %29 : vector<1x96xf32> to vector<8x96xf32>
    %31 = arith.addf %28, %30 : vector<8x96xf32>
    %32 = arith.truncf %31 : vector<8x96xf32> to vector<8x96xbf16>
    %33 = vector.extract_strided_slice %32 {offsets = [0, 0], sizes = [8, 32], strides = [1, 1]} : vector<8x96xbf16> to vector<8x32xbf16>
    %34 = vector.extract_strided_slice %33 {offsets = [0, 0], sizes = [8, 8], strides = [1, 1]} : vector<8x32xbf16> to vector<8x8xbf16>
    %35 = vector.extract_strided_slice %33 {offsets = [0, 8], sizes = [8, 8], strides = [1, 1]} : vector<8x32xbf16> to vector<8x8xbf16>
    %36 = vector.extract_strided_slice %33 {offsets = [0, 16], sizes = [8, 8], strides = [1, 1]} : vector<8x32xbf16> to vector<8x8xbf16>
    %37 = vector.extract_strided_slice %33 {offsets = [0, 24], sizes = [8, 8], strides = [1, 1]} : vector<8x32xbf16> to vector<8x8xbf16>
    %38 = vector.shape_cast %34 : vector<8x8xbf16> to vector<1x8x8xbf16>
    %39 = vector.shape_cast %35 : vector<8x8xbf16> to vector<1x8x8xbf16>
    %40 = vector.shape_cast %36 : vector<8x8xbf16> to vector<1x8x8xbf16>
    %41 = vector.shape_cast %37 : vector<8x8xbf16> to vector<1x8x8xbf16>
    %42 = tpu.concatenate %38, %39, %40, %41 in 0 : vector<1x8x8xbf16>, vector<1x8x8xbf16>, vector<1x8x8xbf16>, vector<1x8x8xbf16> -> vector<4x8x8xbf16>
    %c0_15 = arith.constant 0 : index
    %c0_16 = arith.constant 0 : index
    %c0_17 = arith.constant 0 : index
    %c0_18 = arith.constant 0 : index
    %43 = vector.load %arg7[%c0_15, %c0_16, %c0_17, %c0_18] : memref<1x4x8x8xbf16, #tpu.memory_space<vmem>>, vector<1x4x8x8xbf16>
    %44 = vector.shape_cast %43 : vector<1x4x8x8xbf16> to vector<4x8x8xbf16>
    %45 = vector.shape_cast %42 : vector<4x8x8xbf16> to vector<1x4x8x8xbf16>
    tpu.vector_store %arg7[%c0_15, %c0_16, %c0_17, %c0_18], %45 {strides = array<i32>} : memref<1x4x8x8xbf16, #tpu.memory_space<vmem>>, vector<1x4x8x8xbf16>,
    %46 = vector.extract_strided_slice %32 {offsets = [0, 32], sizes = [8, 32], strides = [1, 1]} : vector<8x96xbf16> to vector<8x32xbf16>
    %47 = vector.extract_strided_slice %46 {offsets = [0, 0], sizes = [8, 8], strides = [1, 1]} : vector<8x32xbf16> to vector<8x8xbf16>
    %48 = vector.extract_strided_slice %46 {offsets = [0, 8], sizes = [8, 8], strides = [1, 1]} : vector<8x32xbf16> to vector<8x8xbf16>
    %49 = vector.extract_strided_slice %46 {offsets = [0, 16], sizes = [8, 8], strides = [1, 1]} : vector<8x32xbf16> to vector<8x8xbf16>
    %50 = vector.extract_strided_slice %46 {offsets = [0, 24], sizes = [8, 8], strides = [1, 1]} : vector<8x32xbf16> to vector<8x8xbf16>
    %51 = vector.shape_cast %47 : vector<8x8xbf16> to vector<1x8x8xbf16>
    %52 = vector.shape_cast %48 : vector<8x8xbf16> to vector<1x8x8xbf16>
    %53 = vector.shape_cast %49 : vector<8x8xbf16> to vector<1x8x8xbf16>
    %54 = vector.shape_cast %50 : vector<8x8xbf16> to vector<1x8x8xbf16>
    %55 = tpu.concatenate %51, %52, %53, %54 in 0 : vector<1x8x8xbf16>, vector<1x8x8xbf16>, vector<1x8x8xbf16>, vector<1x8x8xbf16> -> vector<4x8x8xbf16>
    %c0_19 = arith.constant 0 : index
    %c0_20 = arith.constant 0 : index
    %c0_21 = arith.constant 0 : index
    %c0_22 = arith.constant 0 : index
    %56 = vector.load %arg8[%c0_19, %c0_20, %c0_21, %c0_22] : memref<1x4x8x8xbf16, #tpu.memory_space<vmem>>, vector<1x4x8x8xbf16>
    %57 = vector.shape_cast %56 : vector<1x4x8x8xbf16> to vector<4x8x8xbf16>
    %58 = vector.shape_cast %55 : vector<4x8x8xbf16> to vector<1x4x8x8xbf16>
    tpu.vector_store %arg8[%c0_19, %c0_20, %c0_21, %c0_22], %58 {strides = array<i32>} : memref<1x4x8x8xbf16, #tpu.memory_space<vmem>>, vector<1x4x8x8xbf16>,
    %59 = vector.extract_strided_slice %32 {offsets = [0, 64], sizes = [8, 32], strides = [1, 1]} : vector<8x96xbf16> to vector<8x32xbf16>
    %60 = vector.extract_strided_slice %59 {offsets = [0, 0], sizes = [8, 8], strides = [1, 1]} : vector<8x32xbf16> to vector<8x8xbf16>
    %61 = vector.extract_strided_slice %59 {offsets = [0, 8], sizes = [8, 8], strides = [1, 1]} : vector<8x32xbf16> to vector<8x8xbf16>
    %62 = vector.extract_strided_slice %59 {offsets = [0, 16], sizes = [8, 8], strides = [1, 1]} : vector<8x32xbf16> to vector<8x8xbf16>
    %63 = vector.extract_strided_slice %59 {offsets = [0, 24], sizes = [8, 8], strides = [1, 1]} : vector<8x32xbf16> to vector<8x8xbf16>
    %64 = vector.shape_cast %60 : vector<8x8xbf16> to vector<1x8x8xbf16>
    %65 = vector.shape_cast %61 : vector<8x8xbf16> to vector<1x8x8xbf16>
    %66 = vector.shape_cast %62 : vector<8x8xbf16> to vector<1x8x8xbf16>
    %67 = vector.shape_cast %63 : vector<8x8xbf16> to vector<1x8x8xbf16>
    %68 = tpu.concatenate %64, %65, %66, %67 in 0 : vector<1x8x8xbf16>, vector<1x8x8xbf16>, vector<1x8x8xbf16>, vector<1x8x8xbf16> -> vector<4x8x8xbf16>
    %c0_23 = arith.constant 0 : index
    %c0_24 = arith.constant 0 : index
    %c0_25 = arith.constant 0 : index
    %c0_26 = arith.constant 0 : index
    %69 = vector.load %arg9[%c0_23, %c0_24, %c0_25, %c0_26] : memref<1x4x8x8xbf16, #tpu.memory_space<vmem>>, vector<1x4x8x8xbf16>
    %70 = vector.shape_cast %69 : vector<1x4x8x8xbf16> to vector<4x8x8xbf16>
    %71 = vector.shape_cast %68 : vector<4x8x8xbf16> to vector<1x4x8x8xbf16>
    tpu.vector_store %arg9[%c0_23, %c0_24, %c0_25, %c0_26], %71 {strides = array<i32>} : memref<1x4x8x8xbf16, #tpu.memory_space<vmem>>, vector<1x4x8x8xbf16>,
    return
  }
  func.func @transform_0(%arg0: i32, %arg1: i32) -> (i32, i32, i32) {
    %c0_i32 = arith.constant 0 : i32
    %c0_i32_0 = arith.constant 0 : i32
    return %arg0, %arg1, %c0_i32 : i32, i32, i32
  }
  func.func @transform_1(%arg0: i32, %arg1: i32) -> (i32, i32) {
    %c0_i32 = arith.constant 0 : i32
    %c0_i32_0 = arith.constant 0 : i32
    %c0_i32_1 = arith.constant 0 : i32
    return %c0_i32, %c0_i32_0 : i32, i32
  }
  func.func @transform_2(%arg0: i32, %arg1: i32) -> (i32, i32) {
    %c0_i32 = arith.constant 0 : i32
    %c0_i32_0 = arith.constant 0 : i32
    %c0_i32_1 = arith.constant 0 : i32
    return %c0_i32, %c0_i32_0 : i32, i32
  }
  func.func @transform_3(%arg0: i32, %arg1: i32) -> (i32, i32) {
    %c0_i32 = arith.constant 0 : i32
    %c0_i32_0 = arith.constant 0 : i32
    %c0_i32_1 = arith.constant 0 : i32
    return %c0_i32, %c0_i32_0 : i32, i32
  }
  func.func @transform_4(%arg0: i32, %arg1: i32) -> (i32, i32) {
    %c0_i32 = arith.constant 0 : i32
    %c0_i32_0 = arith.constant 0 : i32
    %c0_i32_1 = arith.constant 0 : i32
    return %c0_i32, %c0_i32_0 : i32, i32
  }
  func.func @transform_5(%arg0: i32, %arg1: i32) -> (i32, i32, i32, i32) {
    %c0_i32 = arith.constant 0 : i32
    %c0_i32_0 = arith.constant 0 : i32
    %c0_i32_1 = arith.constant 0 : i32
    return %arg0, %c0_i32, %arg1, %c0_i32_0 : i32, i32, i32, i32
  }
  func.func @transform_6(%arg0: i32, %arg1: i32) -> (i32, i32, i32, i32) {
    %c0_i32 = arith.constant 0 : i32
    %c0_i32_0 = arith.constant 0 : i32
    %c0_i32_1 = arith.constant 0 : i32
    return %arg0, %c0_i32, %arg1, %c0_i32_0 : i32, i32, i32, i32
  }
  func.func @transform_7(%arg0: i32, %arg1: i32) -> (i32, i32, i32, i32) {
    %c0_i32 = arith.constant 0 : i32
    %c0_i32_0 = arith.constant 0 : i32
    %c0_i32_1 = arith.constant 0 : i32
    return %arg0, %c0_i32, %arg1, %c0_i32_0 : i32, i32, i32, i32
  }
}

module attributes {stable_mosaic.version = 11 : i64} {
  func.func @qkv_projection_kernel(%arg0: i32, %arg1: i32, %arg2: memref<1x8x32xf32, #tpu.memory_space<vmem>>, %arg3: memref<1x32xf32, #tpu.memory_space<vmem>>, %arg4: memref<1x32xf32, #tpu.memory_space<vmem>>, %arg5: memref<32x96xbf16, #tpu.memory_space<vmem>>, %arg6: memref<1x96xf32, #tpu.memory_space<vmem>>, %arg7: memref<1x4x8x8xbf16, #tpu.memory_space<vmem>>, %arg8: memref<1x4x8x8xbf16, #tpu.memory_space<vmem>>, %arg9: memref<1x4x8x8xbf16, #tpu.memory_space<vmem>>) attributes {dimension_semantics = [#tpu.dimension_semantics<parallel>, #tpu.dimension_semantics<parallel>], iteration_bounds = array<i64: 2, 1>, scalar_prefetch = 0 : i64, scratch_operands = 0 : i64, tpu.core_type = #tpu.core_type<tc>, window_params = [{transform_indices = @transform_0, window_bounds = array<i64: 1, 8, 32>}, {pipeline_mode = #tpu.pipeline_mode<synchronous>, transform_indices = @transform_1, window_bounds = array<i64: 1, 32>}, {pipeline_mode = #tpu.pipeline_mode<synchronous>, transform_indices = @transform_2, window_bounds = array<i64: 1, 32>}, {pipeline_mode = #tpu.pipeline_mode<synchronous>, transform_indices = @transform_3, window_bounds = array<i64: 32, 96>}, {pipeline_mode = #tpu.pipeline_mode<synchronous>, transform_indices = @transform_4, window_bounds = array<i64: 1, 96>}, {transform_indices = @transform_5, window_bounds = array<i64: 1, 4, 8, 8>}, {transform_indices = @transform_6, window_bounds = array<i64: 1, 4, 8, 8>}, {transform_indices = @transform_7, window_bounds = array<i64: 1, 4, 8, 8>}]} {
    %c0 = arith.constant 0 : index
    %c0_0 = arith.constant 0 : index
    %c0_1 = arith.constant 0 : index
    %0 = vector.load %arg2[%c0, %c0_0, %c0_1] : memref<1x8x32xf32, #tpu.memory_space<vmem>>, vector<1x8x32xf32>
    %1 = vector.shape_cast %0 : vector<1x8x32xf32> to vector<8x32xf32>
    %c0_2 = arith.constant 0 : index
    %c0_3 = arith.constant 0 : index
    %2 = vector.load %arg3[%c0_2, %c0_3] : memref<1x32xf32, #tpu.memory_space<vmem>>, vector<1x32xf32>
    %c0_4 = arith.constant 0 : index
    %c0_5 = arith.constant 0 : index
    %3 = vector.load %arg4[%c0_4, %c0_5] : memref<1x32xf32, #tpu.memory_space<vmem>>, vector<1x32xf32>
    %cst = arith.constant dense<0.000000e+00> : vector<8xf32>
    %4 = vector.multi_reduction <add>, %1, %cst [1] : vector<8x32xf32> to vector<8xf32>
    %5 = vector.shape_cast %4 : vector<8xf32> to vector<8x1xf32>
    %cst_6 = arith.constant 3.200000e+01 : f32
    %6 = vector.broadcast %cst_6 : f32 to vector<8x1xf32>
    %7 = arith.divf %5, %6 : vector<8x1xf32>
    %8 = vector.broadcast %7 : vector<8x1xf32> to vector<8x32xf32>
    %9 = arith.subf %1, %8 : vector<8x32xf32>
    %10 = arith.mulf %9, %9 : vector<8x32xf32>
    %cst_7 = arith.constant dense<0.000000e+00> : vector<8xf32>
    %11 = vector.multi_reduction <add>, %10, %cst_7 [1] : vector<8x32xf32> to vector<8xf32>
    %12 = vector.shape_cast %11 : vector<8xf32> to vector<8x1xf32>
    %cst_8 = arith.constant 3.200000e+01 : f32
    %13 = vector.broadcast %cst_8 : f32 to vector<8x1xf32>
    %14 = arith.divf %12, %13 : vector<8x1xf32>
    %15 = vector.broadcast %7 : vector<8x1xf32> to vector<8x32xf32>
    %16 = arith.subf %1, %15 : vector<8x32xf32>
    %cst_9 = arith.constant 9.99999974E-6 : f32
    %17 = vector.broadcast %cst_9 : f32 to vector<8x1xf32>
    %18 = arith.addf %14, %17 : vector<8x1xf32>
    %19 = math.rsqrt %18 : vector<8x1xf32>
    %20 = vector.broadcast %19 : vector<8x1xf32> to vector<8x32xf32>
    %21 = arith.mulf %16, %20 : vector<8x32xf32>
    %22 = vector.broadcast %2 : vector<1x32xf32> to vector<8x32xf32>
    %23 = arith.mulf %21, %22 : vector<8x32xf32>
    %24 = vector.broadcast %3 : vector<1x32xf32> to vector<8x32xf32>
    %25 = arith.addf %23, %24 : vector<8x32xf32>
    %26 = arith.truncf %25 : vector<8x32xf32> to vector<8x32xbf16>
    %c0_10 = arith.constant 0 : index
    %c0_11 = arith.constant 0 : index
    %27 = vector.load %arg5[%c0_10, %c0_11] : memref<32x96xbf16, #tpu.memory_space<vmem>>, vector<32x96xbf16>
    %cst_12 = arith.constant dense<0.000000e+00> : vector<8x96xf32>
    %28 = tpu.matmul %26, %27, %cst_12 {dimension_numbers = #tpu.dot_dimension_numbers<[1], [0], [0], [1], [0, 0, 1, 1], [], []>} : vector<8x32xbf16>, vector<32x96xbf16>, vector<8x96xf32> -> vector<8x96xf32>
    %c0_13 = arith.constant 0 : index
    %c0_14 = arith.constant 0 : index
    %29 = vector.load %arg6[%c0_13, %c0_14] : memref<1x96xf32, #tpu.memory_space<vmem>>, vector<1x96xf32>
    %30 = vector.broadcast %29 : vector<1x96xf32> to vector<8x96xf32>
    %31 = arith.addf %28, %30 : vector<8x96xf32>
    %32 = arith.truncf %31 : vector<8x96xf32> to vector<8x96xbf16>
    %33 = vector.extract_strided_slice %32 {offsets = [0, 0], sizes = [8, 32], strides = [1, 1]} : vector<8x96xbf16> to vector<8x32xbf16>
    %34 = vector.extract_strided_slice %33 {offsets = [0, 0], sizes = [8, 8], strides = [1, 1]} : vector<8x32xbf16> to vector<8x8xbf16>
    %35 = vector.extract_strided_slice %33 {offsets = [0, 8], sizes = [8, 8], strides = [1, 1]} : vector<8x32xbf16> to vector<8x8xbf16>
    %36 = vector.extract_strided_slice %33 {offsets = [0, 16], sizes = [8, 8], strides = [1, 1]} : vector<8x32xbf16> to vector<8x8xbf16>
    %37 = vector.extract_strided_slice %33 {offsets = [0, 24], sizes = [8, 8], strides = [1, 1]} : vector<8x32xbf16> to vector<8x8xbf16>
    %38 = vector.shape_cast %34 : vector<8x8xbf16> to vector<1x8x8xbf16>
    %39 = vector.shape_cast %35 : vector<8x8xbf16> to vector<1x8x8xbf16>
    %40 = vector.shape_cast %36 : vector<8x8xbf16> to vector<1x8x8xbf16>
    %41 = vector.shape_cast %37 : vector<8x8xbf16> to vector<1x8x8xbf16>
    %42 = tpu.concatenate %38, %39, %40, %41 in 0 : vector<1x8x8xbf16>, vector<1x8x8xbf16>, vector<1x8x8xbf16>, vector<1x8x8xbf16> -> vector<4x8x8xbf16>
    %c0_15 = arith.constant 0 : index
    %c0_16 = arith.constant 0 : index
    %c0_17 = arith.constant 0 : index
    %c0_18 = arith.constant 0 : index
    %43 = vector.load %arg7[%c0_15, %c0_16, %c0_17, %c0_18] : memref<1x4x8x8xbf16, #tpu.memory_space<vmem>>, vector<1x4x8x8xbf16>
    %44 = vector.shape_cast %43 : vector<1x4x8x8xbf16> to vector<4x8x8xbf16>
    %45 = vector.shape_cast %42 : vector<4x8x8xbf16> to vector<1x4x8x8xbf16>
    tpu.vector_store %arg7[%c0_15, %c0_16, %c0_17, %c0_18], %45 {strides = array<i32>} : memref<1x4x8x8xbf16, #tpu.memory_space<vmem>>, vector<1x4x8x8xbf16>,
    %46 = vector.extract_strided_slice %32 {offsets = [0, 32], sizes = [8, 32], strides = [1, 1]} : vector<8x96xbf16> to vector<8x32xbf16>
    %47 = vector.extract_strided_slice %46 {offsets = [0, 0], sizes = [8, 8], strides = [1, 1]} : vector<8x32xbf16> to vector<8x8xbf16>
    %48 = vector.extract_strided_slice %46 {offsets = [0, 8], sizes = [8, 8], strides = [1, 1]} : vector<8x32xbf16> to vector<8x8xbf16>
    %49 = vector.extract_strided_slice %46 {offsets = [0, 16], sizes = [8, 8], strides = [1, 1]} : vector<8x32xbf16> to vector<8x8xbf16>
    %50 = vector.extract_strided_slice %46 {offsets = [0, 24], sizes = [8, 8], strides = [1, 1]} : vector<8x32xbf16> to vector<8x8xbf16>
    %51 = vector.shape_cast %47 : vector<8x8xbf16> to vector<1x8x8xbf16>
    %52 = vector.shape_cast %48 : vector<8x8xbf16> to vector<1x8x8xbf16>
    %53 = vector.shape_cast %49 : vector<8x8xbf16> to vector<1x8x8xbf16>
    %54 = vector.shape_cast %50 : vector<8x8xbf16> to vector<1x8x8xbf16>
    %55 = tpu.concatenate %51, %52, %53, %54 in 0 : vector<1x8x8xbf16>, vector<1x8x8xbf16>, vector<1x8x8xbf16>, vector<1x8x8xbf16> -> vector<4x8x8xbf16>
    %c0_19 = arith.constant 0 : index
    %c0_20 = arith.constant 0 : index
    %c0_21 = arith.constant 0 : index
    %c0_22 = arith.constant 0 : index
    %56 = vector.load %arg8[%c0_19, %c0_20, %c0_21, %c0_22] : memref<1x4x8x8xbf16, #tpu.memory_space<vmem>>, vector<1x4x8x8xbf16>
    %57 = vector.shape_cast %56 : vector<1x4x8x8xbf16> to vector<4x8x8xbf16>
    %58 = vector.shape_cast %55 : vector<4x8x8xbf16> to vector<1x4x8x8xbf16>
    tpu.vector_store %arg8[%c0_19, %c0_20, %c0_21, %c0_22], %58 {strides = array<i32>} : memref<1x4x8x8xbf16, #tpu.memory_space<vmem>>, vector<1x4x8x8xbf16>,
    %59 = vector.extract_strided_slice %32 {offsets = [0, 64], sizes = [8, 32], strides = [1, 1]} : vector<8x96xbf16> to vector<8x32xbf16>
    %60 = vector.extract_strided_slice %59 {offsets = [0, 0], sizes = [8, 8], strides = [1, 1]} : vector<8x32xbf16> to vector<8x8xbf16>
    %61 = vector.extract_strided_slice %59 {offsets = [0, 8], sizes = [8, 8], strides = [1, 1]} : vector<8x32xbf16> to vector<8x8xbf16>
    %62 = vector.extract_strided_slice %59 {offsets = [0, 16], sizes = [8, 8], strides = [1, 1]} : vector<8x32xbf16> to vector<8x8xbf16>
    %63 = vector.extract_strided_slice %59 {offsets = [0, 24], sizes = [8, 8], strides = [1, 1]} : vector<8x32xbf16> to vector<8x8xbf16>
    %64 = vector.shape_cast %60 : vector<8x8xbf16> to vector<1x8x8xbf16>
    %65 = vector.shape_cast %61 : vector<8x8xbf16> to vector<1x8x8xbf16>
    %66 = vector.shape_cast %62 : vector<8x8xbf16> to vector<1x8x8xbf16>
    %67 = vector.shape_cast %63 : vector<8x8xbf16> to vector<1x8x8xbf16>
    %68 = tpu.concatenate %64, %65, %66, %67 in 0 : vector<1x8x8xbf16>, vector<1x8x8xbf16>, vector<1x8x8xbf16>, vector<1x8x8xbf16> -> vector<4x8x8xbf16>
    %c0_23 = arith.constant 0 : index
    %c0_24 = arith.constant 0 : index
    %c0_25 = arith.constant 0 : index
    %c0_26 = arith.constant 0 : index
    %69 = vector.load %arg9[%c0_23, %c0_24, %c0_25, %c0_26] : memref<1x4x8x8xbf16, #tpu.memory_space<vmem>>, vector<1x4x8x8xbf16>
    %70 = vector.shape_cast %69 : vector<1x4x8x8xbf16> to vector<4x8x8xbf16>
    %71 = vector.shape_cast %68 : vector<4x8x8xbf16> to vector<1x4x8x8xbf16>
    tpu.vector_store %arg9[%c0_23, %c0_24, %c0_25, %c0_26], %71 {strides = array<i32>} : memref<1x4x8x8xbf16, #tpu.memory_space<vmem>>, vector<1x4x8x8xbf16>,
    return
  }
  func.func @transform_0(%arg0: i32, %arg1: i32) -> (i32, i32, i32) {
    %c0_i32 = arith.constant 0 : i32
    %c0_i32_0 = arith.constant 0 : i32
    return %arg0, %arg1, %c0_i32 : i32, i32, i32
  }
  func.func @transform_1(%arg0: i32, %arg1: i32) -> (i32, i32) {
    %c0_i32 = arith.constant 0 : i32
    %c0_i32_0 = arith.constant 0 : i32
    %c0_i32_1 = arith.constant 0 : i32
    return %c0_i32, %c0_i32_0 : i32, i32
  }
  func.func @transform_2(%arg0: i32, %arg1: i32) -> (i32, i32) {
    %c0_i32 = arith.constant 0 : i32
    %c0_i32_0 = arith.constant 0 : i32
    %c0_i32_1 = arith.constant 0 : i32
    return %c0_i32, %c0_i32_0 : i32, i32
  }
  func.func @transform_3(%arg0: i32, %arg1: i32) -> (i32, i32) {
    %c0_i32 = arith.constant 0 : i32
    %c0_i32_0 = arith.constant 0 : i32
    %c0_i32_1 = arith.constant 0 : i32
    return %c0_i32, %c0_i32_0 : i32, i32
  }
  func.func @transform_4(%arg0: i32, %arg1: i32) -> (i32, i32) {
    %c0_i32 = arith.constant 0 : i32
    %c0_i32_0 = arith.constant 0 : i32
    %c0_i32_1 = arith.constant 0 : i32
    return %c0_i32, %c0_i32_0 : i32, i32
  }
  func.func @transform_5(%arg0: i32, %arg1: i32) -> (i32, i32, i32, i32) {
    %c0_i32 = arith.constant 0 : i32
    %c0_i32_0 = arith.constant 0 : i32
    %c0_i32_1 = arith.constant 0 : i32
    return %arg0, %c0_i32, %arg1, %c0_i32_0 : i32, i32, i32, i32
  }
  func.func @transform_6(%arg0: i32, %arg1: i32) -> (i32, i32, i32, i32) {
    %c0_i32 = arith.constant 0 : i32
    %c0_i32_0 = arith.constant 0 : i32
    %c0_i32_1 = arith.constant 0 : i32
    return %arg0, %c0_i32, %arg1, %c0_i32_0 : i32, i32, i32, i32
  }
  func.func @transform_7(%arg0: i32, %arg1: i32) -> (i32, i32, i32, i32) {
    %c0_i32 = arith.constant 0 : i32
    %c0_i32_0 = arith.constant 0 : i32
    %c0_i32_1 = arith.constant 0 : i32
    return %arg0, %c0_i32, %arg1, %c0_i32_0 : i32, i32, i32, i32
  }
}

</mosaic_0001>

<bundles_post_ra>
// kernel: tpu_custom_call.1
= control target key start
LH: loop header
LB: loop body
LE: loop exit
PB: predicated region body
PF: predicated region fallthrough
CT: control target
= control target key end

     0   :  { %s1465_s0 = inlined_call_operand.hbm [shape: f32[2,8,32], index: 0, kind: input, shape index: {}]   ;;  %s1466_s1 = inlined_call_operand.vmem [shape: f32[1,32], index: 1, kind: input, shape index: {}]   ;;  %s1467_s2 = inlined_call_operand.vmem [shape: f32[1,32], index: 2, kind: input, shape index: {}]   ;;  %s1468_s3 = inlined_call_operand.hbm [shape: bf16[32,96], index: 3, kind: input, shape index: {}]   ;;  %s1469_s4 = inlined_call_operand.vmem [shape: f32[1,96], index: 4, kind: input, shape index: {}]   ;;  %s1470_s5 = inlined_call_operand.hbm [shape: bf16[2,4,8,8], index: 5, kind: output, shape index: {0}]   ;;  %s1471_s6 = inlined_call_operand.hbm [shape: bf16[2,4,8,8], index: 6, kind: output, shape index: {1}]   ;;  %s1472_s7 = inlined_call_operand.hbm [shape: bf16[2,4,8,8], index: 7, kind: output, shape index: {2}]  }
   0x1   :  { %1479 = sst [smem:[#allocation16_spill]] %s1468_s3 }
   0x2   :  { %13 = vsyncpa [#allocation3], 0 }
   0x3   :  { %15 = vsyncpa [#allocation3 + $0x1], 0 }
   0x4   :  { %16 = vsyncpa [#allocation6], 0 }
   0x5   :  { %17 = vsyncpa [#allocation4], 0 }
   0x6   :  { %19 = vsyncpa [#allocation4 + $0x1], 0 }
   0x7   :  { %20 = vsyncpa [#allocation9], 0 }
   0x8   :  { %22 = vsyncpa [#allocation9 + $0x1], 0  ;;  %s1129_s24 = smov 0   ;;  %s1131_s25 = smov 0  }
   0x9   :  { %s1133_s26 = smov 0   ;;  %s1135_s27 = smov 0  }
   0xa   :  { %s1137_s28 = smov 0   ;;  %s1139_s29 = smov 0  }
   0xb LB: > { %s1160_s30 = sadd.s32 4294967295, %s1072_s29   ;;  %s1476_s8 = sadd.s32 4294967294, %s1072_s29   ;;  %s1072_s29 = sphi %s1139_s29, %s28_s29   ;;  %s1068_s28 = sphi %s1137_s28, %s1503_s28   ;;  %s1064_s27 = sphi %s1135_s27, %s1502_s27   ;;  %s1060_s26 = sphi %s1133_s26, %s1501_s26   ;;  %s1056_s25 = sphi %s1131_s25, %s1500_s25   ;;  %s1052_s24 = sphi %s1129_s24, %s1499_s24  }
   0xc   : > { %p62_p0 = scmp.ne.s32.totalorder %s1056_s25, %s1052_s24  ;;  %p1473_p1 = scmp.eq.s32.totalorder %s1160_s30, 0 }
   0xd   : > { %p178_p3 = scmp.eq.s32.totalorder %s1476_s8, 1  ;;  %p724_p5 = scmp.ge.s32.totalorder %s1072_s29, 1 }
   0xe   : > { %p1171_p4 = por %p1473_p1, %p62_p0  ;;  %p241_p7 = scmp.lt.s32.totalorder %s1072_s29, 3 }
   0xf   : > { %p1176_p6 = por %p178_p3, %p62_p0  ;;  %s1074_s12 = smov [#allocation5]  }
  0x10   : > { %s1480_s9 = scalar_select %p1171_p4, 1, 0 }
  0x11   : > { %s1481_s10 = scalar_select %p1176_p6, 1, 0 }
  0x12   : > { %p1181_p8 = pnand %p724_p5, %p241_p7  ;;  %s259_s13 = sshll.u32 %s1074_s12, 4  ;;  %s260_s13 = int_to_ptr.vmem [resolvable:$true] %s259_s13 }
  0x13   : > { %s40_s15 = sadd.s32 1, %s1068_s28  ;;  %s1484_s3 = sld [smem:[#allocation16_spill]] }
  0x14   : > { %s1482_s11 = scalar_select %p1181_p8, 1, 0 }
  0x15   : > { %p783_p9 = pneg %p1181_p8 }
  0x17   : > { %p1190_p11 = pnand %p783_p9, %p1473_p1 }
  0x19   : > { %s868_s18 = scalar_lea.hbm %s1484_s3, 256  ;;  %p870_p13 = pneg %p1190_p11 }
  0x1a   : > { %p869_p12 = scmp.ne.s32.totalorder %s1484_s3, %s868_s18  ;;  %p875_p5 = scmp.lt.u32.totalorder %s868_s18, %s1484_s3 }
  0x1c   : > { %p871_p0 = pnand %p870_p13, %p869_p12 }
  0x1e   : > { %p872_p3 = pneg %p871_p0 }
  0x20   : > { %p877_p7 = pnand %p875_p5, %p872_p3 }
  0x22   : > { %880 = shalt.err (!%p877_p7)
}
  0x23   : > { %s881_s23 = scalar_lea.vmem %s260_s13, 256  ;;  %p889_p2 = scmp.lt.s32.totalorder %s260_s13, %s260_s13 }
  0x24   : > { %p882_p9 = scmp.ne.s32.totalorder %s260_s13, %s881_s23  ;;  %p890_p6 = scmp.lt.s32.totalorder %s881_s23, %s881_s23 }
  0x26   : > { %p884_p10 = pnand %p882_p9, %p870_p13  ;;  %p891_p4 = por %p890_p6, %p889_p2 }
  0x28   : > { %p885_p1 = pneg %p884_p10 }
  0x2a   : > { %p892_p8 = pnand %p891_p4, %p885_p1 }
  0x2c   : > { %895 = shalt.err (!%p892_p8)
}
  0x2d   : > { %s1075_s12 = smov 64   ;;  %s1076_s16 = smov 4  }
  0x2e   : > { %786 = dma.hbm_to_vmem [thread:$0]  (!%p1190_p11), %s1484_s3, 256, %s260_s13, [#allocation6], %s1075_s12, %s1075_s12, %s1076_s16  }
  0x2f   : > { %p42_p1 = scmp.ge.s32.totalorder %s40_s15, 2  ;;  %s49_s19 = sadd.s32 1, %s1060_s26 }
  0x30   : > { %p56_p2 = scmp.ne.s32.totalorder %s1060_s26, %s1056_s25  ;;  %p57_p4 = scmp.eq.s32.totalorder %s1072_s29, 0 }
  0x31   : > { %s1505_s15 = smov (%p42_p1, %s40_s15), 0  ;;  %p1487_p8 = scmp.eq.s32.totalorder %s1160_s30, 1 }
  0x32   : > { %1485 = sst [smem:[#allocation15_spill]] %s1505_s15  ;;  %p1217_p6 = por %p57_p4, %p56_p2 }
  0x33   : > { %p1223_p10 = por %p1487_p8, %p56_p2  ;;  %s44_s14 = ssub.s32 %s1068_s28, %s1505_s15 }
  0x34   : > { %p802_p12 = scmp.lt.s32.totalorder %s1072_s29, 2  ;;  %p47_p11 = scmp.eq.s32.totalorder %s44_s14, 0 }
  0x35   : > { %s276_s13 = sand.u32 1, %s1060_s26   ;;  %s728_s12 = sshll.u32 %s1068_s28, 7 }
  0x36   : > { %s727_s22 = sshll.u32 %s276_s13, 3  ;;  %s1238_s18 = scalar_lea.hbm %s1465_s0, %s728_s12 }
  0x37   : > { %s1232_s23 = scalar_select %p47_p11, %s1060_s26, %s49_s19  }
  0x38   : > { %s280_s8 = scalar_lea.vmem [#allocation2], %s727_s22  ;;  %p1244_p13 = pnand %p802_p12, %p1217_p6 }
  0x39   : > { %s288_s3 = sshll.u32 %s280_s8, 4  ;;  %s277_s19 = scalar_lea.sflag [#allocation3], %s276_s13  ;;  %s1240_s3 = int_to_ptr.vmem [resolvable:$true] %s288_s3 }
  0x3a   : > { %s896_s15 = scalar_lea.hbm %s1238_s18, 128  ;;  %p898_p3 = pneg %p1244_p13 }
  0x3b   : > { %p897_p0 = scmp.ne.s32.totalorder %s1238_s18, %s896_s15  ;;  %s901_s12 = scalar_lea.hbm %s1465_s0, 256 }
  0x3c   : > { %p902_p9 = scmp.lt.u32.totalorder %s1238_s18, %s1465_s0  ;;  %p903_p1 = scmp.lt.u32.totalorder %s901_s12, %s896_s15 }
  0x3d   : > { %p899_p5 = pnand %p898_p3, %p897_p0  ;;  %p905_p4 = scmp.lt.u32.totalorder %s896_s15, %s1238_s18 }
  0x3e   : > { %p904_p2 = por %p903_p1, %p902_p9 }
  0x3f   : > { %p900_p7 = pneg %p899_p5 }
  0x40   : > { %p906_p6 = por %p905_p4, %p904_p2 }
  0x42   : > { %p907_p8 = pnand %p906_p6, %p900_p7 }
  0x44   : > { %910 = shalt.err (!%p907_p8)
}
  0x45   : > { %s911_s13 = scalar_lea.vmem %s1240_s3, 128  ;;  %s1077_s17 = smov [#allocation2]  }
  0x46   : > { %p912_p12 = scmp.ne.s32.totalorder %s1240_s3, %s911_s13  ;;  %s916_s22 = sshll.u32 %s1077_s17, 4  ;;  %s917_s22 = int_to_ptr.vmem [resolvable:$false] %s916_s22 }
  0x47   : > { %s918_s8 = scalar_lea.vmem %s917_s22, 256  ;;  %p919_p5 = scmp.lt.s32.totalorder %s1240_s3, %s917_s22 }
  0x48   : > { %p914_p11 = pnand %p912_p12, %p898_p3  ;;  %p920_p9 = scmp.lt.s32.totalorder %s918_s8, %s911_s13 }
  0x4a   : > { %p915_p0 = pneg %p914_p11  ;;  %p921_p1 = por %p920_p9, %p919_p5 }
  0x4c   : > { %p922_p2 = pnand %p921_p1, %p915_p0 }
  0x4e   : > { %925 = shalt.err (!%p922_p2)
}
  0x4f   : > { %790 = dma.hbm_to_vmem [thread:$0]  (!%p1244_p13), %s1238_s18, 128, %s1240_s3, %s277_s19  }
  0x50   : > { %p1490_p7 = scmp.ne.s32.totalorder %s1482_s11, 0 }
  0x51   : > { %s1276_s15 = sand.u32 (!%p1490_p7), 1, %s1056_s25   ;;  %p1491_p3 = scmp.ne.s32.totalorder (!%p1490_p7), %s1480_s9, 0 }
  0x52   : > { %297 = sbr.rel (%p1490_p7) target bundleno = 918 (0x396), region = 40  ;;  %s730_s12 = sshll.u32 (!%p1490_p7), %s1276_s15, 3 }
  0x53   : > { %s300_s20 = scalar_lea.sflag (!%p1490_p7), [#allocation3], %s1276_s15  ;;  %s303_s16 = scalar_lea.vmem (!%p1490_p7), [#allocation2], %s730_s12 }
  0x59   : > { %1035 = dma.done.wait (%p1491_p3), %s300_s20, 128  }
  0x5a   : > { %1037 = vsyncadd (%p1491_p3), %s300_s20, 4294967168  ;;  %p1492_p4 = scmp.eq.s32.totalorder %s1160_s30, 0 }
  0x5c   : > { %1039 = dma.done.wait (%p1492_p4), [#allocation6], 256   ;;  %p1493_p13 = pmov %p1492_p4 }
  0x5d   : > { %vm352_vm0 = vcmask 261120   ;;  %v349_v0 = vld [vmem:[%s303_s16] sm:$0xff]  ;;  %v864_v7 = vld [vmem:[#allocation5] sm:$0xff]   ;;  %v1078_v8 = vmov 0.0   ;;  %vm1079_vm1 = vmmov 0   ;;  %v865_v9 = vld [vmem:[#allocation5 + $0x8] sm:$0xff]  }
  0x5e   : > { %1041 = vsyncadd (%p1493_p13), [#allocation6], 4294967040  ;;  %v353_v1 = vsel %vm352_vm0, %v349_v0, 0.0  ;;  %763 = vmatprep.subr.bf16.mxu0 %v1078_v8  ;;  %767 = vmatprep.mubr.msk.bf16.mxu0 %vm1079_vm1, %v1078_v8  ;;  %v735_v14 = vld [vmem:[%s1466_s1] ss:$0 sm:$0xff]  ;;  %s1301_s13 = sshll.u32 %s1276_s15, 4 }
  0x5f   : > { %354 = vadd.xlane.f32.xlu0 %v353_v1  ;;  %764 = vmatpush3.bf16.msra.mxu0 %v864_v7  ;;  %v736_v16 = vld [vmem:[%s1467_s2] ss:$0 sm:$0xff]  ;;  %vm459_vm2 = vcmask 60416   ;;  %s1080_s17 = smov 104   ;;  %s1081_s22 = smov 120  }
  0x60   : > { %765 = vmatprep.subr.bf16.mxu0 %v1078_v8  ;;  %v737_v20 = vld [vmem:[%s1469_s4] ss:$0 sm:$0xff]  ;;  %s333_s8 = scalar_lea.vmem [#allocation7], %s1301_s13  ;;  %s1082_s12 = smov 112  }
  0x61   : > { %s1478_s20 = smov 96   ;;  %s1084_s16 = smov 64  }
  0x62   : > { %s529_s3 = sshll.u32 %s333_s8, 4  ;;  %s1311_s9 = sshll.u32 %s1064_s27, 8  ;;  %s1313_s3 = int_to_ptr.vmem [resolvable:$true] %s529_s3 }
  0x63   : > { %766 = vmatpush3.bf16.msra.mxu0 %v865_v9  ;;  %s1322_s14 = scalar_lea.hbm %s1470_s5, %s1311_s9  ;;  %s505_s27 = scalar_lea.sflag [#allocation4], %s1276_s15 }
  0x64   : > { %s926_s19 = scalar_lea.vmem %s1313_s3, 256 }
  0x65   : > { %p927_p6 = scmp.ne.s32.totalorder %s1313_s3, %s926_s19 }
  0x67   : > { %p928_p8 = pnand %p927_p6, %p1223_p10 }
  0x69   : > { %p929_p12 = pneg %p928_p8 }
  0xec   : > { %v355_v2 = vpop.xlane.xlu0 %354 }
  0xed   : > { %v357_v3 = vmul.f32 0.03125, %v355_v2 }
  0xef   : > { %v358_v4 = vsub.f32 %v349_v0, %v357_v3 }
  0xf1   : > { %v359_v5 = vmul.f32 %v358_v4, %v358_v4 }
  0xf3   : > { %v360_v6 = vsel %vm352_vm0, %v359_v5, 0.0 }
  0xf4   : > { %361 = vadd.xlane.f32.xlu0 %v360_v6 }
 0x181   : > { %v362_v10 = vpop.xlane.xlu0 %361 }
 0x182   : > { %v363_v11 = vmul.f32 0.03125, %v362_v10 }
 0x184   : > { %v364_v12 = vadd.f32 1e-05, %v363_v11 }
 0x186   : > { %866 = vrsqrt.f32 %v364_v12 }
 0x190   : > { %v867_v13 = vpop.eup %866 }
 0x191   : > { %v366_v15 = vmul.f32 %v867_v13, %v358_v4 }
 0x193   : > { %v373_v17 = vmul.f32 %v735_v14, %v366_v15 }
 0x195   : > { %v380_v18 = vadd.f32 %v736_v16, %v373_v17 }
 0x197   : > { %v381_v19 = vpack.c.bf16 %v380_v18, %v380_v18 }
 0x199   : > { %768 = vmatmul.mubr.msk.bf16.vlgmr.msra.gmra.mrb[0].mxu0 %vm352_vm0, %v381_v19 }
 0x26c   : > { %v442_v21 = vpop.f32.mrb[0].mxu0 }
 0x26d   : > { %v443_v22 = vadd.f32 %v737_v20, %v442_v21  ;;  %v769_v23 = vpop.f32.mrb[1].mxu0 }
 0x26e   : > { %v445_v24 = vpop.f32.mrb[2].mxu0 }
 0x26f   : > { %v448_v25 = vpack.c.bf16 %v443_v22, %v443_v22  ;;  %v770_v26 = vpop.f32.mrb[3].mxu0 }
 0x271   : > { %456 = vrot.lane.b32.xlu0 %v448_v25, %s1080_s17  ;;  %450 = vrot.lane.b32.xlu1 %v448_v25, %s1081_s22  ;;  %460 = vst.msk [vmem:[%s333_s8] sm:$0xf] %vm459_vm2, %v448_v25  ;;  %s1085_s17 = smov [#allocation7]  }
 0x272   : > { %s930_s22 = sshll.u32 %s1085_s17, 4  ;;  %s931_s22 = int_to_ptr.vmem [resolvable:$false] %s930_s22 }
 0x273   : > { %p933_p11 = scmp.lt.s32.totalorder %s1313_s3, %s931_s22 }
 0x275   : > { %453 = vrot.lane.b32.xlu1 %v448_v25, %s1082_s12 }
 0x279   : > { %472 = vrot.lane.b32.xlu1 %v448_v25, %s1478_s20 }
 0x27d   : > { %488 = vrot.lane.b32.xlu1 %v448_v25, %s1084_s16 }
 0x2e3   : > { %v457_v27 = vpop.permute.xlu0 %456  ;;  %v451_v28 = vpop.permute.xlu1 %450 }
 0x2e4   : > { %463 = vst.msk [vmem:[%s333_s8 + $0xc] sm:$0xf] %vm459_vm2, %v457_v27  ;;  %461 = vst.msk [vmem:[%s333_s8 + $0x4] sm:$0xf] %vm459_vm2, %v451_v28  ;;  %v742_v29 = vcombine.low %v451_v28, %v451_v28 }
 0x2e6   : > { %474 = vrot.lane.b32.xlu1 %v742_v29, %s1478_s20 }
 0x2e7   : > { %v454_v30 = vpop.permute.xlu1 %453 }
 0x2e8   : > { %462 = vst.msk [vmem:[%s333_s8 + $0x8] sm:$0xf] %vm459_vm2, %v454_v30  ;;  %v743_v31 = vcombine.low %v454_v30, %v454_v30  ;;  %s932_s8 = scalar_lea.vmem %s931_s22, 512 }
 0x2e9   : > { %p934_p0 = scmp.lt.s32.totalorder %s932_s8, %s926_s19 }
 0x2ea   : > { %492 = vrot.lane.b32.xlu0 %v743_v31, %s1084_s16  ;;  %476 = vrot.lane.b32.xlu1 %v743_v31, %s1478_s20 }
 0x2eb   : > { %v473_v32 = vpop.permute.xlu1 %472  ;;  %p935_p5 = por %p934_p0, %p933_p11 }
 0x2ed   : > { %p936_p9 = pnand %p935_p5, %p929_p12 }
 0x2ef   : > { %939 = shalt.err (!%p936_p9)
}
 0x2f0   : > { %s940_s12 = scalar_lea.hbm %s1322_s14, 256  ;;  %s944_s17 = scalar_lea.hbm %s1470_s5, 512 }
 0x2f1   : > { %p941_p1 = scmp.ne.s32.totalorder %s1322_s14, %s940_s12  ;;  %p945_p3 = scmp.lt.u32.totalorder %s1322_s14, %s1470_s5 }
 0x2f2   : > { %p946_p4 = scmp.lt.u32.totalorder %s944_s17, %s940_s12  ;;  %p948_p6 = scmp.lt.u32.totalorder %s940_s12, %s1322_s14 }
 0x2f3   : > { %p942_p2 = pnand %p941_p1, %p1223_p10 }
 0x2f4   : > { %p947_p13 = por %p946_p4, %p945_p3 }
 0x2f5   : > { %p943_p7 = pneg %p942_p2 }
 0x2f6   : > { %p949_p8 = por %p948_p6, %p947_p13 }
 0x2f8   : > { %p950_p12 = pnand %p949_p8, %p943_p7 }
 0x2fa   : > { %953 = shalt.err (!%p950_p12)
}
 0x2fb   : > { %s1086_s19 = smov 4   ;;  %v744_v33 = vcombine.low %v457_v27, %v457_v27  ;;  %s340_s20 = scalar_lea.vmem [#allocation8], %s1301_s13  ;;  %v489_v34 = vpop.permute.xlu1 %488 }
 0x2fc   : > { %777 = dma.vmem_to_hbm [thread:$0]  (%p1223_p10), %s1313_s3, 256, %s1322_s14, %s505_s27, %s1084_s16, %s1084_s16, %s1086_s19  }
 0x2fd   : > { %484 = vst.msk [vmem:[%s340_s20] sm:$0xf] %vm459_vm2, %v473_v32  ;;  %s1494_s8 = smov 96   ;;  %s1355_s12 = scalar_lea.vmem [#allocation10], %s1301_s13 }
 0x2fe   : > { %478 = vrot.lane.b32.xlu1 %v744_v33, %s1494_s8  ;;  %500 = vst.msk [vmem:[%s1355_s12] sm:$0xf] %vm459_vm2, %v489_v34  ;;  %s546_s15 = sshll.u32 %s340_s20, 4  ;;  %s509_s3 = sand.u32 1, %s1160_s30   ;;  %s1366_s15 = int_to_ptr.vmem [resolvable:$true] %s546_s15 }
 0x2ff   : > { %s1372_s27 = scalar_lea.hbm %s1471_s6, %s1311_s9  ;;  %s1375_s11 = scalar_lea.sflag [#allocation9], %s509_s3 }
 0x300   : > { %s954_s30 = scalar_lea.vmem %s1366_s15, 256  ;;  %s1087_s18 = smov [#allocation8]  }
 0x301   : > { %p955_p11 = scmp.ne.s32.totalorder %s1366_s15, %s954_s30  ;;  %s958_s17 = sshll.u32 %s1087_s18, 4  ;;  %s959_s17 = int_to_ptr.vmem [resolvable:$false] %s958_s17 }
 0x302   : > { %490 = vrot.lane.b32.xlu1 %v742_v29, %s1084_s16  ;;  %s960_s22 = scalar_lea.vmem %s959_s17, 512  ;;  %p961_p9 = scmp.lt.s32.totalorder %s1366_s15, %s959_s17 }
 0x303   : > { %p956_p0 = pnand %p955_p11, %p1223_p10  ;;  %p962_p1 = scmp.lt.s32.totalorder %s960_s22, %s954_s30 }
 0x305   : > { %p957_p5 = pneg %p956_p0  ;;  %p963_p2 = por %p962_p1, %p961_p9 }
 0x306   : > { %494 = vrot.lane.b32.xlu1 %v744_v33, %s1084_s16 }
 0x307   : > { %p964_p7 = pnand %p963_p2, %p957_p5 }
 0x358   : > { %v475_v35 = vpop.permute.xlu1 %474 }
 0x359   : > { %485 = vst.msk [vmem:[%s340_s20 + $0x4] sm:$0xf] %vm459_vm2, %v475_v35 }
 0x35c   : > { %v493_v36 = vpop.permute.xlu0 %492  ;;  %v477_v37 = vpop.permute.xlu1 %476 }
 0x35d   : > { %502 = vst.msk [vmem:[%s1355_s12 + $0x8] sm:$0xf] %vm459_vm2, %v493_v36  ;;  %486 = vst.msk [vmem:[%s340_s20 + $0x8] sm:$0xf] %vm459_vm2, %v477_v37 }
 0x370   : > { %v479_v38 = vpop.permute.xlu1 %478 }
 0x371   : > { %487 = vst.msk [vmem:[%s340_s20 + $0xc] sm:$0xf] %vm459_vm2, %v479_v38 }
 0x372   : > { %967 = shalt.err (!%p964_p7)
}
 0x373   : > { %s968_s20 = scalar_lea.hbm %s1372_s27, 256  ;;  %s972_s13 = scalar_lea.hbm %s1471_s6, 512 }
 0x374   : > { %p969_p3 = scmp.ne.s32.totalorder %s1372_s27, %s968_s20  ;;  %p973_p6 = scmp.lt.u32.totalorder %s1372_s27, %s1471_s6 }
 0x375   : > { %p974_p8 = scmp.lt.u32.totalorder %s972_s13, %s968_s20  ;;  %p976_p11 = scmp.lt.u32.totalorder %s968_s20, %s1372_s27 }
 0x376   : > { %p970_p4 = pnand %p969_p3, %p1223_p10 }
 0x377   : > { %p975_p12 = por %p974_p8, %p973_p6 }
 0x378   : > { %p971_p13 = pneg %p970_p4 }
 0x379   : > { %p977_p0 = por %p976_p11, %p975_p12 }
 0x37b   : > { %p978_p5 = pnand %p977_p0, %p971_p13 }
 0x37d   : > { %981 = shalt.err (!%p978_p5)
}
 0x37e   : > { %778 = dma.vmem_to_hbm [thread:$0]  (%p1223_p10), %s1366_s15, 256, %s1372_s27, %s1375_s11, %s1084_s16, %s1084_s16, %s1086_s19   ;;  %v491_v39 = vpop.permute.xlu1 %490 }
 0x37f   : > { %s563_s30 = sshll.u32 %s1355_s12, 4  ;;  %501 = vst.msk [vmem:[%s1355_s12 + $0x4] sm:$0xf] %vm459_vm2, %v491_v39  ;;  %s1411_s20 = scalar_lea.hbm %s1472_s7, %s1311_s9  ;;  %s1405_s30 = int_to_ptr.vmem [resolvable:$true] %s563_s30 }
 0x380   : > { %s982_s8 = scalar_lea.vmem %s1405_s30, 256  ;;  %s1088_s15 = smov [#allocation10]  }
 0x381   : > { %p983_p9 = scmp.ne.s32.totalorder %s1405_s30, %s982_s8  ;;  %s986_s27 = sshll.u32 %s1088_s15, 4  ;;  %s987_s27 = int_to_ptr.vmem [resolvable:$false] %s986_s27 }
 0x382   : > { %v495_v40 = vpop.permute.xlu1 %494  ;;  %s988_s3 = scalar_lea.vmem %s987_s27, 512  ;;  %p989_p7 = scmp.lt.s32.totalorder %s1405_s30, %s987_s27 }
 0x383   : > { %503 = vst.msk [vmem:[%s1355_s12 + $0xc] sm:$0xf] %vm459_vm2, %v495_v40  ;;  %p984_p1 = pnand %p983_p9, %p1223_p10  ;;  %p990_p3 = scmp.lt.s32.totalorder %s988_s3, %s982_s8 }
 0x385   : > { %p985_p2 = pneg %p984_p1  ;;  %p991_p4 = por %p990_p3, %p989_p7 }
 0x387   : > { %p992_p13 = pnand %p991_p4, %p985_p2 }
 0x389   : > { %995 = shalt.err (!%p992_p13)
}
 0x38a   : > { %s996_s9 = scalar_lea.hbm %s1411_s20, 256  ;;  %s1000_s14 = scalar_lea.hbm %s1472_s7, 512 }
 0x38b   : > { %p997_p6 = scmp.ne.s32.totalorder %s1411_s20, %s996_s9  ;;  %p1001_p11 = scmp.lt.u32.totalorder %s1411_s20, %s1472_s7 }
 0x38c   : > { %p1002_p0 = scmp.lt.u32.totalorder %s1000_s14, %s996_s9  ;;  %p1004_p9 = scmp.lt.u32.totalorder %s996_s9, %s1411_s20 }
 0x38d   : > { %p998_p8 = pnand %p997_p6, %p1223_p10 }
 0x38e   : > { %p1003_p5 = por %p1002_p0, %p1001_p11 }
 0x38f   : > { %p999_p12 = pneg %p998_p8 }
 0x390   : > { %p1005_p1 = por %p1004_p9, %p1003_p5 }
 0x392   : > { %p1006_p2 = pnand %p1005_p1, %p999_p12 }
 0x394   : > { %1009 = shalt.err (!%p1006_p2)
}
 0x395   : > { %779 = dma.vmem_to_hbm [thread:$0]  (%p1223_p10), %s1405_s30, 256, %s1411_s20, %s1375_s11, %s1084_s16, %s1084_s16, %s1086_s19  }
 0x396 PF: > { %s578_s22 = sand.u32 1, %s1052_s24   ;;  %p1495_p7 = scmp.ne.s32.totalorder %s1481_s10, 0 }
 0x397   : > { %p1496_p3 = scmp.ge.s32.totalorder %s1072_s29, 2  ;;  %s579_s8 = scalar_lea.sflag [#allocation4], %s578_s22 }
 0x399   : > { %p792_p4 = pnand %p1496_p3, %p1495_p7 }
 0x39b   : > { %1043 = dma.done.wait (!%p792_p4), %s579_s8, 256  }
 0x39c   : > { %1045 = vsyncadd (!%p792_p4), %s579_s8, 4294967040  ;;  %s1497_s21 = sadd.s32 4294967294, %s1072_s29  }
 0x39d   : > { %s587_s15 = sand.u32 1, %s1497_s21  }
 0x39e   : > { %s588_s27 = scalar_lea.sflag [#allocation9], %s587_s15 }
 0x39f   : > { %1047 = dma.done.wait (!%p792_p4), %s588_s27, 512  }
 0x3a0   : > { %1049 = vsyncadd (!%p792_p4), %s588_s27, 4294966784  ;;  %s28_s29 = sadd.s32 1, %s1072_s29   ;;  %s1498_s16 = sld [smem:[#allocation15_spill]] }
 0x3a1   : > { %p25_p10 = scmp.ge.s32.totalorder %s28_s29, 4   ;;  %s1499_s24 = smov %s1056_s25 }
 0x3a2   : > { %s1500_s25 = smov %s1060_s26  ;;  %s1501_s26 = smov %s1232_s23 }
 0x3a3   : > { %s1502_s27 = smov %s1068_s28  ;;  %27 = sbr.rel (!%p25_p10) target bundleno = 11 (0xb), region = 121 }
 0x3a6   : > { %s1503_s28 = smov %s1498_s16 }
 0x3aa   :  { %602 = vsyncpa [#allocation3], 1 }
 0x3ab   :  { %604 = vsyncpa [#allocation3 + $0x1], 1 }
 0x3ac   :  { %605 = vsyncpa [#allocation6], 1 }
 0x3ad   :  { %606 = vsyncpa [#allocation4], 1 }
 0x3ae   :  { %608 = vsyncpa [#allocation4 + $0x1], 1 }
 0x3af   :  { %609 = vsyncpa [#allocation9], 1 }
 0x3b0   :  { %611 = vsyncpa [#allocation9 + $0x1], 1 }

// kernel: tpu_custom_call.1
= control target key start
LH: loop header
LB: loop body
LE: loop exit
PB: predicated region body
PF: predicated region fallthrough
CT: control target
= control target key end

     0   :  { %s1465_s0 = inlined_call_operand.hbm [shape: f32[2,8,32], index: 0, kind: input, shape index: {}]   ;;  %s1466_s1 = inlined_call_operand.vmem [shape: f32[1,32], index: 1, kind: input, shape index: {}]   ;;  %s1467_s2 = inlined_call_operand.vmem [shape: f32[1,32], index: 2, kind: input, shape index: {}]   ;;  %s1468_s3 = inlined_call_operand.hbm [shape: bf16[32,96], index: 3, kind: input, shape index: {}]   ;;  %s1469_s4 = inlined_call_operand.vmem [shape: f32[1,96], index: 4, kind: input, shape index: {}]   ;;  %s1470_s5 = inlined_call_operand.hbm [shape: bf16[2,4,8,8], index: 5, kind: output, shape index: {0}]   ;;  %s1471_s6 = inlined_call_operand.hbm [shape: bf16[2,4,8,8], index: 6, kind: output, shape index: {1}]   ;;  %s1472_s7 = inlined_call_operand.hbm [shape: bf16[2,4,8,8], index: 7, kind: output, shape index: {2}]  }
   0x1   :  { %1479 = sst [smem:[#allocation16_spill]] %s1468_s3 }
   0x2   :  { %13 = vsyncpa [#allocation3], 0 }
   0x3   :  { %15 = vsyncpa [#allocation3 + $0x1], 0 }
   0x4   :  { %16 = vsyncpa [#allocation6], 0 }
   0x5   :  { %17 = vsyncpa [#allocation4], 0 }
   0x6   :  { %19 = vsyncpa [#allocation4 + $0x1], 0 }
   0x7   :  { %20 = vsyncpa [#allocation9], 0 }
   0x8   :  { %22 = vsyncpa [#allocation9 + $0x1], 0  ;;  %s1129_s24 = smov 0   ;;  %s1131_s25 = smov 0  }
   0x9   :  { %s1133_s26 = smov 0   ;;  %s1135_s27 = smov 0  }
   0xa   :  { %s1137_s28 = smov 0   ;;  %s1139_s29 = smov 0  }
   0xb LB: > { %s1160_s30 = sadd.s32 4294967295, %s1072_s29   ;;  %s1476_s8 = sadd.s32 4294967294, %s1072_s29   ;;  %s1072_s29 = sphi %s1139_s29, %s28_s29   ;;  %s1068_s28 = sphi %s1137_s28, %s1503_s28   ;;  %s1064_s27 = sphi %s1135_s27, %s1502_s27   ;;  %s1060_s26 = sphi %s1133_s26, %s1501_s26   ;;  %s1056_s25 = sphi %s1131_s25, %s1500_s25   ;;  %s1052_s24 = sphi %s1129_s24, %s1499_s24  }
   0xc   : > { %p62_p0 = scmp.ne.s32.totalorder %s1056_s25, %s1052_s24  ;;  %p1473_p1 = scmp.eq.s32.totalorder %s1160_s30, 0 }
   0xd   : > { %p178_p3 = scmp.eq.s32.totalorder %s1476_s8, 1  ;;  %p724_p5 = scmp.ge.s32.totalorder %s1072_s29, 1 }
   0xe   : > { %p1171_p4 = por %p1473_p1, %p62_p0  ;;  %p241_p7 = scmp.lt.s32.totalorder %s1072_s29, 3 }
   0xf   : > { %p1176_p6 = por %p178_p3, %p62_p0  ;;  %s1074_s12 = smov [#allocation5]  }
  0x10   : > { %s1480_s9 = scalar_select %p1171_p4, 1, 0 }
  0x11   : > { %s1481_s10 = scalar_select %p1176_p6, 1, 0 }
  0x12   : > { %p1181_p8 = pnand %p724_p5, %p241_p7  ;;  %s259_s13 = sshll.u32 %s1074_s12, 4  ;;  %s260_s13 = int_to_ptr.vmem [resolvable:$true] %s259_s13 }
  0x13   : > { %s40_s15 = sadd.s32 1, %s1068_s28  ;;  %s1484_s3 = sld [smem:[#allocation16_spill]] }
  0x14   : > { %s1482_s11 = scalar_select %p1181_p8, 1, 0 }
  0x15   : > { %p783_p9 = pneg %p1181_p8 }
  0x17   : > { %p1190_p11 = pnand %p783_p9, %p1473_p1 }
  0x19   : > { %s868_s18 = scalar_lea.hbm %s1484_s3, 256  ;;  %p870_p13 = pneg %p1190_p11 }
  0x1a   : > { %p869_p12 = scmp.ne.s32.totalorder %s1484_s3, %s868_s18  ;;  %p875_p5 = scmp.lt.u32.totalorder %s868_s18, %s1484_s3 }
  0x1c   : > { %p871_p0 = pnand %p870_p13, %p869_p12 }
  0x1e   : > { %p872_p3 = pneg %p871_p0 }
  0x20   : > { %p877_p7 = pnand %p875_p5, %p872_p3 }
  0x22   : > { %880 = shalt.err (!%p877_p7)
}
  0x23   : > { %s881_s23 = scalar_lea.vmem %s260_s13, 256  ;;  %p889_p2 = scmp.lt.s32.totalorder %s260_s13, %s260_s13 }
  0x24   : > { %p882_p9 = scmp.ne.s32.totalorder %s260_s13, %s881_s23  ;;  %p890_p6 = scmp.lt.s32.totalorder %s881_s23, %s881_s23 }
  0x26   : > { %p884_p10 = pnand %p882_p9, %p870_p13  ;;  %p891_p4 = por %p890_p6, %p889_p2 }
  0x28   : > { %p885_p1 = pneg %p884_p10 }
  0x2a   : > { %p892_p8 = pnand %p891_p4, %p885_p1 }
  0x2c   : > { %895 = shalt.err (!%p892_p8)
}
  0x2d   : > { %s1075_s12 = smov 64   ;;  %s1076_s16 = smov 4  }
  0x2e   : > { %786 = dma.hbm_to_vmem [thread:$0]  (!%p1190_p11), %s1484_s3, 256, %s260_s13, [#allocation6], %s1075_s12, %s1075_s12, %s1076_s16  }
  0x2f   : > { %p42_p1 = scmp.ge.s32.totalorder %s40_s15, 2  ;;  %s49_s19 = sadd.s32 1, %s1060_s26 }
  0x30   : > { %p56_p2 = scmp.ne.s32.totalorder %s1060_s26, %s1056_s25  ;;  %p57_p4 = scmp.eq.s32.totalorder %s1072_s29, 0 }
  0x31   : > { %s1505_s15 = smov (%p42_p1, %s40_s15), 0  ;;  %p1487_p8 = scmp.eq.s32.totalorder %s1160_s30, 1 }
  0x32   : > { %1485 = sst [smem:[#allocation15_spill]] %s1505_s15  ;;  %p1217_p6 = por %p57_p4, %p56_p2 }
  0x33   : > { %p1223_p10 = por %p1487_p8, %p56_p2  ;;  %s44_s14 = ssub.s32 %s1068_s28, %s1505_s15 }
  0x34   : > { %p802_p12 = scmp.lt.s32.totalorder %s1072_s29, 2  ;;  %p47_p11 = scmp.eq.s32.totalorder %s44_s14, 0 }
  0x35   : > { %s276_s13 = sand.u32 1, %s1060_s26   ;;  %s728_s12 = sshll.u32 %s1068_s28, 7 }
  0x36   : > { %s727_s22 = sshll.u32 %s276_s13, 3  ;;  %s1238_s18 = scalar_lea.hbm %s1465_s0, %s728_s12 }
  0x37   : > { %s1232_s23 = scalar_select %p47_p11, %s1060_s26, %s49_s19  }
  0x38   : > { %s280_s8 = scalar_lea.vmem [#allocation2], %s727_s22  ;;  %p1244_p13 = pnand %p802_p12, %p1217_p6 }
  0x39   : > { %s288_s3 = sshll.u32 %s280_s8, 4  ;;  %s277_s19 = scalar_lea.sflag [#allocation3], %s276_s13  ;;  %s1240_s3 = int_to_ptr.vmem [resolvable:$true] %s288_s3 }
  0x3a   : > { %s896_s15 = scalar_lea.hbm %s1238_s18, 128  ;;  %p898_p3 = pneg %p1244_p13 }
  0x3b   : > { %p897_p0 = scmp.ne.s32.totalorder %s1238_s18, %s896_s15  ;;  %s901_s12 = scalar_lea.hbm %s1465_s0, 256 }
  0x3c   : > { %p902_p9 = scmp.lt.u32.totalorder %s1238_s18, %s1465_s0  ;;  %p903_p1 = scmp.lt.u32.totalorder %s901_s12, %s896_s15 }
  0x3d   : > { %p899_p5 = pnand %p898_p3, %p897_p0  ;;  %p905_p4 = scmp.lt.u32.totalorder %s896_s15, %s1238_s18 }
  0x3e   : > { %p904_p2 = por %p903_p1, %p902_p9 }
  0x3f   : > { %p900_p7 = pneg %p899_p5 }
  0x40   : > { %p906_p6 = por %p905_p4, %p904_p2 }
  0x42   : > { %p907_p8 = pnand %p906_p6, %p900_p7 }
  0x44   : > { %910 = shalt.err (!%p907_p8)
}
  0x45   : > { %s911_s13 = scalar_lea.vmem %s1240_s3, 128  ;;  %s1077_s17 = smov [#allocation2]  }
  0x46   : > { %p912_p12 = scmp.ne.s32.totalorder %s1240_s3, %s911_s13  ;;  %s916_s22 = sshll.u32 %s1077_s17, 4  ;;  %s917_s22 = int_to_ptr.vmem [resolvable:$false] %s916_s22 }
  0x47   : > { %s918_s8 = scalar_lea.vmem %s917_s22, 256  ;;  %p919_p5 = scmp.lt.s32.totalorder %s1240_s3, %s917_s22 }
  0x48   : > { %p914_p11 = pnand %p912_p12, %p898_p3  ;;  %p920_p9 = scmp.lt.s32.totalorder %s918_s8, %s911_s13 }
  0x4a   : > { %p915_p0 = pneg %p914_p11  ;;  %p921_p1 = por %p920_p9, %p919_p5 }
  0x4c   : > { %p922_p2 = pnand %p921_p1, %p915_p0 }
  0x4e   : > { %925 = shalt.err (!%p922_p2)
}
  0x4f   : > { %790 = dma.hbm_to_vmem [thread:$0]  (!%p1244_p13), %s1238_s18, 128, %s1240_s3, %s277_s19  }
  0x50   : > { %p1490_p7 = scmp.ne.s32.totalorder %s1482_s11, 0 }
  0x51   : > { %s1276_s15 = sand.u32 (!%p1490_p7), 1, %s1056_s25   ;;  %p1491_p3 = scmp.ne.s32.totalorder (!%p1490_p7), %s1480_s9, 0 }
  0x52   : > { %297 = sbr.rel (%p1490_p7) target bundleno = 918 (0x396), region = 40  ;;  %s730_s12 = sshll.u32 (!%p1490_p7), %s1276_s15, 3 }
  0x53   : > { %s300_s20 = scalar_lea.sflag (!%p1490_p7), [#allocation3], %s1276_s15  ;;  %s303_s16 = scalar_lea.vmem (!%p1490_p7), [#allocation2], %s730_s12 }
  0x59   : > { %1035 = dma.done.wait (%p1491_p3), %s300_s20, 128  }
  0x5a   : > { %1037 = vsyncadd (%p1491_p3), %s300_s20, 4294967168  ;;  %p1492_p4 = scmp.eq.s32.totalorder %s1160_s30, 0 }
  0x5c   : > { %1039 = dma.done.wait (%p1492_p4), [#allocation6], 256   ;;  %p1493_p13 = pmov %p1492_p4 }
  0x5d   : > { %vm352_vm0 = vcmask 261120   ;;  %v349_v0 = vld [vmem:[%s303_s16] sm:$0xff]  ;;  %v864_v7 = vld [vmem:[#allocation5] sm:$0xff]   ;;  %v1078_v8 = vmov 0.0   ;;  %vm1079_vm1 = vmmov 0   ;;  %v865_v9 = vld [vmem:[#allocation5 + $0x8] sm:$0xff]  }
  0x5e   : > { %1041 = vsyncadd (%p1493_p13), [#allocation6], 4294967040  ;;  %v353_v1 = vsel %vm352_vm0, %v349_v0, 0.0  ;;  %763 = vmatprep.subr.bf16.mxu0 %v1078_v8  ;;  %767 = vmatprep.mubr.msk.bf16.mxu0 %vm1079_vm1, %v1078_v8  ;;  %v735_v14 = vld [vmem:[%s1466_s1] ss:$0 sm:$0xff]  ;;  %s1301_s13 = sshll.u32 %s1276_s15, 4 }
  0x5f   : > { %354 = vadd.xlane.f32.xlu0 %v353_v1  ;;  %764 = vmatpush3.bf16.msra.mxu0 %v864_v7  ;;  %v736_v16 = vld [vmem:[%s1467_s2] ss:$0 sm:$0xff]  ;;  %vm459_vm2 = vcmask 60416   ;;  %s1080_s17 = smov 104   ;;  %s1081_s22 = smov 120  }
  0x60   : > { %765 = vmatprep.subr.bf16.mxu0 %v1078_v8  ;;  %v737_v20 = vld [vmem:[%s1469_s4] ss:$0 sm:$0xff]  ;;  %s333_s8 = scalar_lea.vmem [#allocation7], %s1301_s13  ;;  %s1082_s12 = smov 112  }
  0x61   : > { %s1478_s20 = smov 96   ;;  %s1084_s16 = smov 64  }
  0x62   : > { %s529_s3 = sshll.u32 %s333_s8, 4  ;;  %s1311_s9 = sshll.u32 %s1064_s27, 8  ;;  %s1313_s3 = int_to_ptr.vmem [resolvable:$true] %s529_s3 }
  0x63   : > { %766 = vmatpush3.bf16.msra.mxu0 %v865_v9  ;;  %s1322_s14 = scalar_lea.hbm %s1470_s5, %s1311_s9  ;;  %s505_s27 = scalar_lea.sflag [#allocation4], %s1276_s15 }
  0x64   : > { %s926_s19 = scalar_lea.vmem %s1313_s3, 256 }
  0x65   : > { %p927_p6 = scmp.ne.s32.totalorder %s1313_s3, %s926_s19 }
  0x67   : > { %p928_p8 = pnand %p927_p6, %p1223_p10 }
  0x69   : > { %p929_p12 = pneg %p928_p8 }
  0xec   : > { %v355_v2 = vpop.xlane.xlu0 %354 }
  0xed   : > { %v357_v3 = vmul.f32 0.03125, %v355_v2 }
  0xef   : > { %v358_v4 = vsub.f32 %v349_v0, %v357_v3 }
  0xf1   : > { %v359_v5 = vmul.f32 %v358_v4, %v358_v4 }
  0xf3   : > { %v360_v6 = vsel %vm352_vm0, %v359_v5, 0.0 }
  0xf4   : > { %361 = vadd.xlane.f32.xlu0 %v360_v6 }
 0x181   : > { %v362_v10 = vpop.xlane.xlu0 %361 }
 0x182   : > { %v363_v11 = vmul.f32 0.03125, %v362_v10 }
 0x184   : > { %v364_v12 = vadd.f32 1e-05, %v363_v11 }
 0x186   : > { %866 = vrsqrt.f32 %v364_v12 }
 0x190   : > { %v867_v13 = vpop.eup %866 }
 0x191   : > { %v366_v15 = vmul.f32 %v867_v13, %v358_v4 }
 0x193   : > { %v373_v17 = vmul.f32 %v735_v14, %v366_v15 }
 0x195   : > { %v380_v18 = vadd.f32 %v736_v16, %v373_v17 }
 0x197   : > { %v381_v19 = vpack.c.bf16 %v380_v18, %v380_v18 }
 0x199   : > { %768 = vmatmul.mubr.msk.bf16.vlgmr.msra.gmra.mrb[0].mxu0 %vm352_vm0, %v381_v19 }
 0x26c   : > { %v442_v21 = vpop.f32.mrb[0].mxu0 }
 0x26d   : > { %v443_v22 = vadd.f32 %v737_v20, %v442_v21  ;;  %v769_v23 = vpop.f32.mrb[1].mxu0 }
 0x26e   : > { %v445_v24 = vpop.f32.mrb[2].mxu0 }
 0x26f   : > { %v448_v25 = vpack.c.bf16 %v443_v22, %v443_v22  ;;  %v770_v26 = vpop.f32.mrb[3].mxu0 }
 0x271   : > { %456 = vrot.lane.b32.xlu0 %v448_v25, %s1080_s17  ;;  %450 = vrot.lane.b32.xlu1 %v448_v25, %s1081_s22  ;;  %460 = vst.msk [vmem:[%s333_s8] sm:$0xf] %vm459_vm2, %v448_v25  ;;  %s1085_s17 = smov [#allocation7]  }
 0x272   : > { %s930_s22 = sshll.u32 %s1085_s17, 4  ;;  %s931_s22 = int_to_ptr.vmem [resolvable:$false] %s930_s22 }
 0x273   : > { %p933_p11 = scmp.lt.s32.totalorder %s1313_s3, %s931_s22 }
 0x275   : > { %453 = vrot.lane.b32.xlu1 %v448_v25, %s1082_s12 }
 0x279   : > { %472 = vrot.lane.b32.xlu1 %v448_v25, %s1478_s20 }
 0x27d   : > { %488 = vrot.lane.b32.xlu1 %v448_v25, %s1084_s16 }
 0x2e3   : > { %v457_v27 = vpop.permute.xlu0 %456  ;;  %v451_v28 = vpop.permute.xlu1 %450 }
 0x2e4   : > { %463 = vst.msk [vmem:[%s333_s8 + $0xc] sm:$0xf] %vm459_vm2, %v457_v27  ;;  %461 = vst.msk [vmem:[%s333_s8 + $0x4] sm:$0xf] %vm459_vm2, %v451_v28  ;;  %v742_v29 = vcombine.low %v451_v28, %v451_v28 }
 0x2e6   : > { %474 = vrot.lane.b32.xlu1 %v742_v29, %s1478_s20 }
 0x2e7   : > { %v454_v30 = vpop.permute.xlu1 %453 }
 0x2e8   : > { %462 = vst.msk [vmem:[%s333_s8 + $0x8] sm:$0xf] %vm459_vm2, %v454_v30  ;;  %v743_v31 = vcombine.low %v454_v30, %v454_v30  ;;  %s932_s8 = scalar_lea.vmem %s931_s22, 512 }
 0x2e9   : > { %p934_p0 = scmp.lt.s32.totalorder %s932_s8, %s926_s19 }
 0x2ea   : > { %492 = vrot.lane.b32.xlu0 %v743_v31, %s1084_s16  ;;  %476 = vrot.lane.b32.xlu1 %v743_v31, %s1478_s20 }
 0x2eb   : > { %v473_v32 = vpop.permute.xlu1 %472  ;;  %p935_p5 = por %p934_p0, %p933_p11 }
 0x2ed   : > { %p936_p9 = pnand %p935_p5, %p929_p12 }
 0x2ef   : > { %939 = shalt.err (!%p936_p9)
}
 0x2f0   : > { %s940_s12 = scalar_lea.hbm %s1322_s14, 256  ;;  %s944_s17 = scalar_lea.hbm %s1470_s5, 512 }
 0x2f1   : > { %p941_p1 = scmp.ne.s32.totalorder %s1322_s14, %s940_s12  ;;  %p945_p3 = scmp.lt.u32.totalorder %s1322_s14, %s1470_s5 }
 0x2f2   : > { %p946_p4 = scmp.lt.u32.totalorder %s944_s17, %s940_s12  ;;  %p948_p6 = scmp.lt.u32.totalorder %s940_s12, %s1322_s14 }
 0x2f3   : > { %p942_p2 = pnand %p941_p1, %p1223_p10 }
 0x2f4   : > { %p947_p13 = por %p946_p4, %p945_p3 }
 0x2f5   : > { %p943_p7 = pneg %p942_p2 }
 0x2f6   : > { %p949_p8 = por %p948_p6, %p947_p13 }
 0x2f8   : > { %p950_p12 = pnand %p949_p8, %p943_p7 }
 0x2fa   : > { %953 = shalt.err (!%p950_p12)
}
 0x2fb   : > { %s1086_s19 = smov 4   ;;  %v744_v33 = vcombine.low %v457_v27, %v457_v27  ;;  %s340_s20 = scalar_lea.vmem [#allocation8], %s1301_s13  ;;  %v489_v34 = vpop.permute.xlu1 %488 }
 0x2fc   : > { %777 = dma.vmem_to_hbm [thread:$0]  (%p1223_p10), %s1313_s3, 256, %s1322_s14, %s505_s27, %s1084_s16, %s1084_s16, %s1086_s19  }
 0x2fd   : > { %484 = vst.msk [vmem:[%s340_s20] sm:$0xf] %vm459_vm2, %v473_v32  ;;  %s1494_s8 = smov 96   ;;  %s1355_s12 = scalar_lea.vmem [#allocation10], %s1301_s13 }
 0x2fe   : > { %478 = vrot.lane.b32.xlu1 %v744_v33, %s1494_s8  ;;  %500 = vst.msk [vmem:[%s1355_s12] sm:$0xf] %vm459_vm2, %v489_v34  ;;  %s546_s15 = sshll.u32 %s340_s20, 4  ;;  %s509_s3 = sand.u32 1, %s1160_s30   ;;  %s1366_s15 = int_to_ptr.vmem [resolvable:$true] %s546_s15 }
 0x2ff   : > { %s1372_s27 = scalar_lea.hbm %s1471_s6, %s1311_s9  ;;  %s1375_s11 = scalar_lea.sflag [#allocation9], %s509_s3 }
 0x300   : > { %s954_s30 = scalar_lea.vmem %s1366_s15, 256  ;;  %s1087_s18 = smov [#allocation8]  }
 0x301   : > { %p955_p11 = scmp.ne.s32.totalorder %s1366_s15, %s954_s30  ;;  %s958_s17 = sshll.u32 %s1087_s18, 4  ;;  %s959_s17 = int_to_ptr.vmem [resolvable:$false] %s958_s17 }
 0x302   : > { %490 = vrot.lane.b32.xlu1 %v742_v29, %s1084_s16  ;;  %s960_s22 = scalar_lea.vmem %s959_s17, 512  ;;  %p961_p9 = scmp.lt.s32.totalorder %s1366_s15, %s959_s17 }
 0x303   : > { %p956_p0 = pnand %p955_p11, %p1223_p10  ;;  %p962_p1 = scmp.lt.s32.totalorder %s960_s22, %s954_s30 }
 0x305   : > { %p957_p5 = pneg %p956_p0  ;;  %p963_p2 = por %p962_p1, %p961_p9 }
 0x306   : > { %494 = vrot.lane.b32.xlu1 %v744_v33, %s1084_s16 }
 0x307   : > { %p964_p7 = pnand %p963_p2, %p957_p5 }
 0x358   : > { %v475_v35 = vpop.permute.xlu1 %474 }
 0x359   : > { %485 = vst.msk [vmem:[%s340_s20 + $0x4] sm:$0xf] %vm459_vm2, %v475_v35 }
 0x35c   : > { %v493_v36 = vpop.permute.xlu0 %492  ;;  %v477_v37 = vpop.permute.xlu1 %476 }
 0x35d   : > { %502 = vst.msk [vmem:[%s1355_s12 + $0x8] sm:$0xf] %vm459_vm2, %v493_v36  ;;  %486 = vst.msk [vmem:[%s340_s20 + $0x8] sm:$0xf] %vm459_vm2, %v477_v37 }
 0x370   : > { %v479_v38 = vpop.permute.xlu1 %478 }
 0x371   : > { %487 = vst.msk [vmem:[%s340_s20 + $0xc] sm:$0xf] %vm459_vm2, %v479_v38 }
 0x372   : > { %967 = shalt.err (!%p964_p7)
}
 0x373   : > { %s968_s20 = scalar_lea.hbm %s1372_s27, 256  ;;  %s972_s13 = scalar_lea.hbm %s1471_s6, 512 }
 0x374   : > { %p969_p3 = scmp.ne.s32.totalorder %s1372_s27, %s968_s20  ;;  %p973_p6 = scmp.lt.u32.totalorder %s1372_s27, %s1471_s6 }
 0x375   : > { %p974_p8 = scmp.lt.u32.totalorder %s972_s13, %s968_s20  ;;  %p976_p11 = scmp.lt.u32.totalorder %s968_s20, %s1372_s27 }
 0x376   : > { %p970_p4 = pnand %p969_p3, %p1223_p10 }
 0x377   : > { %p975_p12 = por %p974_p8, %p973_p6 }
 0x378   : > { %p971_p13 = pneg %p970_p4 }
 0x379   : > { %p977_p0 = por %p976_p11, %p975_p12 }
 0x37b   : > { %p978_p5 = pnand %p977_p0, %p971_p13 }
 0x37d   : > { %981 = shalt.err (!%p978_p5)
}
 0x37e   : > { %778 = dma.vmem_to_hbm [thread:$0]  (%p1223_p10), %s1366_s15, 256, %s1372_s27, %s1375_s11, %s1084_s16, %s1084_s16, %s1086_s19   ;;  %v491_v39 = vpop.permute.xlu1 %490 }
 0x37f   : > { %s563_s30 = sshll.u32 %s1355_s12, 4  ;;  %501 = vst.msk [vmem:[%s1355_s12 + $0x4] sm:$0xf] %vm459_vm2, %v491_v39  ;;  %s1411_s20 = scalar_lea.hbm %s1472_s7, %s1311_s9  ;;  %s1405_s30 = int_to_ptr.vmem [resolvable:$true] %s563_s30 }
 0x380   : > { %s982_s8 = scalar_lea.vmem %s1405_s30, 256  ;;  %s1088_s15 = smov [#allocation10]  }
 0x381   : > { %p983_p9 = scmp.ne.s32.totalorder %s1405_s30, %s982_s8  ;;  %s986_s27 = sshll.u32 %s1088_s15, 4  ;;  %s987_s27 = int_to_ptr.vmem [resolvable:$false] %s986_s27 }
 0x382   : > { %v495_v40 = vpop.permute.xlu1 %494  ;;  %s988_s3 = scalar_lea.vmem %s987_s27, 512  ;;  %p989_p7 = scmp.lt.s32.totalorder %s1405_s30, %s987_s27 }
 0x383   : > { %503 = vst.msk [vmem:[%s1355_s12 + $0xc] sm:$0xf] %vm459_vm2, %v495_v40  ;;  %p984_p1 = pnand %p983_p9, %p1223_p10  ;;  %p990_p3 = scmp.lt.s32.totalorder %s988_s3, %s982_s8 }
 0x385   : > { %p985_p2 = pneg %p984_p1  ;;  %p991_p4 = por %p990_p3, %p989_p7 }
 0x387   : > { %p992_p13 = pnand %p991_p4, %p985_p2 }
 0x389   : > { %995 = shalt.err (!%p992_p13)
}
 0x38a   : > { %s996_s9 = scalar_lea.hbm %s1411_s20, 256  ;;  %s1000_s14 = scalar_lea.hbm %s1472_s7, 512 }
 0x38b   : > { %p997_p6 = scmp.ne.s32.totalorder %s1411_s20, %s996_s9  ;;  %p1001_p11 = scmp.lt.u32.totalorder %s1411_s20, %s1472_s7 }
 0x38c   : > { %p1002_p0 = scmp.lt.u32.totalorder %s1000_s14, %s996_s9  ;;  %p1004_p9 = scmp.lt.u32.totalorder %s996_s9, %s1411_s20 }
 0x38d   : > { %p998_p8 = pnand %p997_p6, %p1223_p10 }
 0x38e   : > { %p1003_p5 = por %p1002_p0, %p1001_p11 }
 0x38f   : > { %p999_p12 = pneg %p998_p8 }
 0x390   : > { %p1005_p1 = por %p1004_p9, %p1003_p5 }
 0x392   : > { %p1006_p2 = pnand %p1005_p1, %p999_p12 }
 0x394   : > { %1009 = shalt.err (!%p1006_p2)
}
 0x395   : > { %779 = dma.vmem_to_hbm [thread:$0]  (%p1223_p10), %s1405_s30, 256, %s1411_s20, %s1375_s11, %s1084_s16, %s1084_s16, %s1086_s19  }
 0x396 PF: > { %s578_s22 = sand.u32 1, %s1052_s24   ;;  %p1495_p7 = scmp.ne.s32.totalorder %s1481_s10, 0 }
 0x397   : > { %p1496_p3 = scmp.ge.s32.totalorder %s1072_s29, 2  ;;  %s579_s8 = scalar_lea.sflag [#allocation4], %s578_s22 }
 0x399   : > { %p792_p4 = pnand %p1496_p3, %p1495_p7 }
 0x39b   : > { %1043 = dma.done.wait (!%p792_p4), %s579_s8, 256  }
 0x39c   : > { %1045 = vsyncadd (!%p792_p4), %s579_s8, 4294967040  ;;  %s1497_s21 = sadd.s32 4294967294, %s1072_s29  }
 0x39d   : > { %s587_s15 = sand.u32 1, %s1497_s21  }
 0x39e   : > { %s588_s27 = scalar_lea.sflag [#allocation9], %s587_s15 }
 0x39f   : > { %1047 = dma.done.wait (!%p792_p4), %s588_s27, 512  }
 0x3a0   : > { %1049 = vsyncadd (!%p792_p4), %s588_s27, 4294966784  ;;  %s28_s29 = sadd.s32 1, %s1072_s29   ;;  %s1498_s16 = sld [smem:[#allocation15_spill]] }
 0x3a1   : > { %p25_p10 = scmp.ge.s32.totalorder %s28_s29, 4   ;;  %s1499_s24 = smov %s1056_s25 }
 0x3a2   : > { %s1500_s25 = smov %s1060_s26  ;;  %s1501_s26 = smov %s1232_s23 }
 0x3a3   : > { %s1502_s27 = smov %s1068_s28  ;;  %27 = sbr.rel (!%p25_p10) target bundleno = 11 (0xb), region = 121 }
 0x3a6   : > { %s1503_s28 = smov %s1498_s16 }
 0x3aa   :  { %602 = vsyncpa [#allocation3], 1 }
 0x3ab   :  { %604 = vsyncpa [#allocation3 + $0x1], 1 }
 0x3ac   :  { %605 = vsyncpa [#allocation6], 1 }
 0x3ad   :  { %606 = vsyncpa [#allocation4], 1 }
 0x3ae   :  { %608 = vsyncpa [#allocation4 + $0x1], 1 }
 0x3af   :  { %609 = vsyncpa [#allocation9], 1 }
 0x3b0   :  { %611 = vsyncpa [#allocation9 + $0x1], 1 }

</bundles_post_ra>
